<compile_context>
chip_gen: v7x
topology: tpu7x:2x2x1
jax: 0.10.0
libtpu: 0.0.40
codegen_flags: <defaults>
</compile_context>

<pallas_src>
import functools

import jax
import jax.numpy as jnp
from jax import lax
from jax.experimental import pallas as pl
from jax.experimental.pallas import tpu as pltpu

EPS = 1e-6       # the torch module's own LayerNorm uses epsilon=1e-06
KV_TILE = 512    # flash-attention KV tile: bounds live scores to (S, KV_TILE) f32


def _layer_norm(x):
  # One-pass LN (var = E[x^2] - mean^2): one lane reduction pass fewer and no centered
  # (S,H) temporary.  Torch module's LayerNorm has gamma=ones / beta=zeros (plain
  # tensors, never trained), so the affine part is exactly identity.
  mean = jnp.mean(x, axis=-1, keepdims=True)
  mean_sq = jnp.mean(x * x, axis=-1, keepdims=True)
  var = jnp.maximum(mean_sq - mean * mean, 0.0)
  return (x - mean) * lax.rsqrt(var + EPS)        # rsqrt -> EUP, no VPU divide


# ---------- one-time probe: pin the rotate direction of pltpu.roll on this backend ----------
def _roll_probe_kernel(x_ref, o_ref):
  o_ref[...] = pltpu.roll(x_ref[...], 1, 0)


@functools.lru_cache(maxsize=None)
def _seq_shift_mode() -> str:
  """'down' if pltpu.roll(x,1,axis=0) moves row i -> i+1 (np.roll semantics),
  'up' if reversed, 'concat' fallback if the sublane rotate does not lower."""
  try:
    x = lax.broadcasted_iota(jnp.float32, (8, 128), 0)      # row i filled with i
    y = pl.pallas_call(
        _roll_probe_kernel,
        out_shape=jax.ShapeDtypeStruct((8, 128), jnp.float32))(x)
    return "down" if float(jax.block_until_ready(y)[1, 0]) == 0.0 else "up"
  except Exception:          # pragma: no cover - defensive fallback, unambiguous semantics
    return "concat"


# ---------------- fused Conv_with_Attention_Block kernel (one batch row per grid step) ----------------
def fused_block_kernel(x_ref, dww_ref, dwb_ref, pww_ref, pwb_ref,
                       w1_ref, b1_ref, w2_ref, b2_ref, o_ref, *, shift_mode):
  f32, bf16 = jnp.float32, jnp.bfloat16
  x = x_ref[0]                                    # (S, H) activation, VMEM/vreg resident
  S, H = x.shape
  n_conv = dww_ref.shape[0]

  # grid-invariant boundary masks as (S,1) columns (broadcast over lanes), hoisted once
  row = lax.broadcasted_iota(jnp.int32, (S, 1), 0)
  first_row, last_row = row == 0, row == S - 1

  def shifted(ln):
    # rows shifted by +/-1 along seq with zero padding (== Conv2d padding=(1,0), k=3)
    if shift_mode == "concat":                    # fallback path (no hardware rotate)
      zero = jnp.zeros((1, H), f32)
      return (jnp.concatenate([zero, ln[:-1, :]], axis=0),
              jnp.concatenate([ln[1:, :], zero], axis=0))
    s_prev, s_next = (1, S - 1) if shift_mode == "down" else (S - 1, 1)
    x_prev = jnp.where(first_row, 0.0, pltpu.roll(ln, s_prev, 0))   # XLU, O(S*H)
    x_next = jnp.where(last_row, 0.0, pltpu.roll(ln, s_next, 0))
    return x_prev, x_next

  out = x.astype(f32)
  # TODO(synk): on v6e/v7x carry `out` / the shifted taps in bf16 (keep LN stats, softmax
  # and matmul accumulation in f32) to halve activation VMEM; kept f32 so v5e (no bf16
  # VPU/EUP) runs the same code path.

  # ---- conv chain: (LayerNorm + depthwise 3-tap + pointwise 1x1) + residual; weights resident ----
  for l in range(n_conv):                         # static unroll, n_conv is small
    ln = _layer_norm(out)
    x_prev, x_next = shifted(ln)
    wdw = dww_ref[l]                              # (3, H) f32 depthwise taps
    dw = (x_prev * wdw[0:1, :] + ln * wdw[1:2, :] + x_next * wdw[2:3, :] + dwb_ref[l])
    pw = jnp.dot(dw.astype(bf16), pww_ref[l],     # bf16 x bf16 -> f32 accumulate on MXU
                 preferred_element_type=f32) + pwb_ref[l]
    out = pw + out                                # residual

  # ---- self attention: softmax(ln @ ln^T) @ ln (Q=K=V=ln, no 1/sqrt(H) scale, as in torch) ----
  # Flash-tiled over KV chunks: online softmax keeps the live score slab at (S, kv_tile)
  # f32 instead of the full (S, S) f32 matrix.
  ln = _layer_norm(out)
  ln_b = ln.astype(bf16)
  kv_tile = min(S, KV_TILE)
  m_i = jnp.full((S, 1), -jnp.inf, f32)
  l_i = jnp.zeros((S, 1), f32)
  acc = jnp.zeros((S, H), f32)
  for j0 in range(0, S, kv_tile):                 # static unroll; trip count = ceil(S/kv_tile)
    k_t = ln_b[j0:j0 + kv_tile, :]                # (tk, H) bf16; V chunk is the same tensor
    # contraction on the last dims of both operands == Q @ K_chunk^T.
    # TODO(synk): at production S*H, pre-transpose ln once to an (H, S) scratch so the MXU
    # sees a plain (M,K)x(K,N) per chunk (avoids a per-chunk vxpose if Mosaic inserts one).
    s = lax.dot_general(ln_b, k_t, (((1,), (1,)), ((), ())),
                        preferred_element_type=f32)          # (S, tk) f32
    m_new = jnp.maximum(m_i, jnp.max(s, axis=-1, keepdims=True))
    a = jnp.exp(m_i - m_new)
    p = jnp.exp(s - m_new)
    l_i = a * l_i + jnp.sum(p, axis=-1, keepdims=True)
    acc = a * acc + jnp.dot(p.astype(bf16), k_t, preferred_element_type=f32)
    m_i = m_new
  # deliberate approximation: EUP vrcp (~1e-3 rel err) instead of an exact VPU divide
  out = acc * pl.reciprocal(l_i, approx=True) + out           # residual

  # ---- feed forward: LayerNorm + Linear + ReLU + Linear + residual ----
  ln = _layer_norm(out)
  h = jnp.dot(ln.astype(bf16), w1_ref[...], preferred_element_type=f32) + b1_ref[...]
  h = jnp.maximum(h, 0.0)
  ffn = jnp.dot(h.astype(bf16), w2_ref[...], preferred_element_type=f32) + b2_ref[...]
  o_ref[0] = (ffn + out).astype(o_ref.dtype)


def conv_with_attention_block(x, params):
  """Fused forward. Input last dim == hidden_size, so the torch forward's
  `else: outputs = inputs` branch applies (no Linear(2H->H)+LayerNorm projection)."""
  # TODO(synk): the projection branch (inputs.shape[-1] == 2*hidden) is not implemented.
  B, S, H = x.shape
  bf16 = jnp.bfloat16
  dw_w = jnp.stack([p["dw_w"] for p in params["conv_layers"]])                 # (L,3,H) f32
  dw_b = jnp.stack([p["dw_b"] for p in params["conv_layers"]])                 # (L,1,H) f32
  pw_w = jnp.stack([p["pw_w"] for p in params["conv_layers"]]).astype(bf16)    # (L,H,H) bf16
  pw_b = jnp.stack([p["pw_b"] for p in params["conv_layers"]])                 # (L,1,H) f32
  w1 = params["ff"]["w1"].astype(bf16)                                         # (H,I)  bf16
  w2 = params["ff"]["w2"].astype(bf16)                                         # (I,H)  bf16
  b1, b2 = params["ff"]["b1"], params["ff"]["b2"]
  L, I = dw_w.shape[0], w1.shape[1]
  assert dw_w.shape[1] == 3, "fused kernel implements kernel_size=3 with padding=1"

  kernel = functools.partial(fused_block_kernel, shift_mode=_seq_shift_mode())

  # Weights are grid-invariant: place each whole array in VMEM (no block_shape /
  # index_map -> not pipelined -> single-buffered), instead of the default 2x buffers.
  weight_spec = pl.BlockSpec(memory_space=pltpu.MemorySpace.VMEM)

  nbytes = lambda a: int(a.size) * a.dtype.itemsize
  weight_bytes = sum(nbytes(a) for a in (dw_w, dw_b, pw_w, pw_b, w1, b1, w2, b2))
  cost = pl.CostEstimate(
      # MXU: L pointwise + 2 attention matmuls + 2 FF matmuls; small VPU term for taps/LN.
      flops=int(B * (2 * L * S * H * H + 4 * S * S * H + 4 * S * H * I + 16 * (L + 3) * S * H)),
      transcendentals=int(B * (S * S + (L + 3) * S)),          # softmax exp + rsqrt/recip
      bytes_accessed=int(2 * nbytes(x) + weight_bytes))

  # TODO(synk): at production sizes (H>=1024, S>=2048) additionally (a) seq-tile the
  # conv/FF phase with a 1-row halo and q-tile the attention as a second 'parallel' grid
  # axis (so a B==1 call still feeds both v7x TensorCores), and (b) stream pw_w/w1/w2 from
  # pl.ANY HBM refs via a manual double-buffer so only ~2 weight tiles live in v7x's
  # 64 MiB VMEM at a time.
  return pl.pallas_call(
      kernel,
      out_shape=jax.ShapeDtypeStruct((B, S, H), x.dtype),
      grid=(B,),                      # parallel batch axis -> shards across v7x's 2 TCs
      in_specs=[
          pl.BlockSpec((1, S, H), lambda b: (b, 0, 0)),        # activation: pipelined per batch
          weight_spec, weight_spec, weight_spec, weight_spec,  # dw_w, dw_b, pw_w, pw_b
          weight_spec, weight_spec, weight_spec, weight_spec,  # w1, b1, w2, b2
      ],
      out_specs=pl.BlockSpec((1, S, H), lambda b: (b, 0, 0)),
      compiler_params=pltpu.CompilerParams(
          dimension_semantics=("parallel",),
          vmem_limit_bytes=64 * 1024 * 1024),   # explicit limit (>= scoped defaults; == v7x physical)
      cost_estimate=cost,
  )(x, dw_w, dw_b, pw_w, pw_b, w1, b1, w2, b2)


# ---------------- deterministic parameter init (mirrors module __init__) ----------------
def init_params(key, hidden, inter, n_conv, kernel_size=3):
  params = {"conv_layers": []}
  for _ in range(n_conv):
    key, k1, k2, k3, k4 = jax.random.split(key, 5)
    # depthwise Conv2d(H, H, groups=H, kernel=(3,1)): kaiming_normal_, fan_in = 3
    dw_w = jax.random.normal(k1, (kernel_size, hidden), jnp.float32) * jnp.sqrt(2.0 / kernel_size)
    dw_b = (jax.random.uniform(k2, (1, hidden), jnp.float32) * 2.0 - 1.0) / jnp.sqrt(kernel_size)
    # pointwise Conv2d(H, H, kernel=(1,1)): kaiming_normal_, fan_in = H; stored (C_in, C_out)
    pw_w = jax.random.normal(k3, (hidden, hidden), jnp.float32) * jnp.sqrt(2.0 / hidden)
    pw_b = (jax.random.uniform(k4, (1, hidden), jnp.float32) * 2.0 - 1.0) / jnp.sqrt(hidden)
    params["conv_layers"].append(dict(dw_w=dw_w, dw_b=dw_b, pw_w=pw_w, pw_b=pw_b))
  key, k1, k2 = jax.random.split(key, 3)
  # FeedForward linears: kaiming_normal_ weights, zero biases; stored transposed (in, out)
  w1 = jax.random.normal(k1, (hidden, inter), jnp.float32) * jnp.sqrt(2.0 / hidden)
  w2 = jax.random.normal(k2, (inter, hidden), jnp.float32) * jnp.sqrt(2.0 / inter)
  params["ff"] = dict(w1=w1, b1=jnp.zeros((1, inter), jnp.float32),
                      w2=w2, b2=jnp.zeros((1, hidden), jnp.float32))
  return params


# ---------------- pure-JAX reference (torch-faithful two-pass LN, exact softmax) ----------------
def _layer_norm_ref(x):
  mean = jnp.mean(x, axis=-1, keepdims=True)
  var = jnp.mean(jnp.square(x - mean), axis=-1, keepdims=True)
  return (x - mean) / jnp.sqrt(var + EPS)


def ref_forward(x, params):
  bf16, f32 = jnp.bfloat16, jnp.float32
  out = x
  for p in params["conv_layers"]:
    ln = _layer_norm_ref(out)
    pad = jnp.pad(ln, ((0, 0), (1, 1), (0, 0)))
    dw = (pad[:, :-2] * p["dw_w"][0] + pad[:, 1:-1] * p["dw_w"][1]
          + pad[:, 2:] * p["dw_w"][2] + p["dw_b"])
    pw = jnp.einsum("bsh,hk->bsk", dw.astype(bf16), p["pw_w"].astype(bf16),
                    preferred_element_type=f32) + p["pw_b"]
    out = pw + out
  ln = _layer_norm_ref(out)
  ln_b = ln.astype(bf16)
  scores = jnp.einsum("bqh,bkh->bqk", ln_b, ln_b, preferred_element_type=f32)
  att = jax.nn.softmax(scores, axis=-1)
  out = jnp.einsum("bqk,bkh->bqh", att.astype(bf16), ln_b,
                   preferred_element_type=f32) + out
  ln = _layer_norm_ref(out)
  h = jax.nn.relu(jnp.einsum("bsh,hi->bsi", ln.astype(bf16),
                             params["ff"]["w1"].astype(bf16),
                             preferred_element_type=f32) + params["ff"]["b1"])
  out = jnp.einsum("bsi,ih->bsh", h.astype(bf16), params["ff"]["w2"].astype(bf16),
                   preferred_element_type=f32) + params["ff"]["b2"] + out
  return out


if __name__ == "__main__":
  B, S, H, INTER, NCONV = 2, 8, 32, 64, 4
  key = jax.random.PRNGKey(0)
  kx, kp = jax.random.split(key)
  x = jax.random.normal(kx, (B, S, H), jnp.float32)
  params = init_params(kp, H, INTER, NCONV, kernel_size=3)

  out = jax.block_until_ready(conv_with_attention_block(x, params))
  assert out.shape == (B, S, H), out.shape

  ref = ref_forward(x, params)
  if not jnp.allclose(out, ref, rtol=2e-2, atol=2e-2):
    raise AssertionError(
        f"mismatch vs reference: max abs diff = {float(jnp.max(jnp.abs(out - ref)))}")
  print("KERNEL_OK")
</pallas_src>

<mosaic_0001>
module attributes {stable_mosaic.version = 11 : i64} {
  func.func @_roll_probe_kernel(%arg0: memref<8x128xf32, #tpu.memory_space<vmem>>, %arg1: memref<8x128xf32, #tpu.memory_space<vmem>>) attributes {dimension_semantics = [], scalar_prefetch = 0 : i64, scratch_operands = 0 : i64, tpu.core_type = #tpu.core_type<tc>} {
    %c0 = arith.constant 0 : index
    %c0_0 = arith.constant 0 : index
    %0 = vector.load %arg0[%c0, %c0_0] : memref<8x128xf32, #tpu.memory_space<vmem>>, vector<8x128xf32>
    %c1_i32 = arith.constant 1 : i32
    %1 = tpu.dynamic_rotate %0 by %c1_i32 dim 0 : vector<8x128xf32>, i32 -> vector<8x128xf32>
    %c0_1 = arith.constant 0 : index
    %c0_2 = arith.constant 0 : index
    %2 = vector.load %arg1[%c0_1, %c0_2] : memref<8x128xf32, #tpu.memory_space<vmem>>, vector<8x128xf32>
    tpu.vector_store %arg1[%c0_1, %c0_2], %1 {strides = array<i32>} : memref<8x128xf32, #tpu.memory_space<vmem>>, vector<8x128xf32>,
    return
  }
}

module attributes {stable_mosaic.version = 11 : i64} {
  func.func @fused_block_kernel(%arg0: i32, %arg1: memref<1x8x32xf32, #tpu.memory_space<vmem>>, %arg2: memref<4x3x32xf32, #tpu.memory_space<vmem>>, %arg3: memref<4x1x32xf32, #tpu.memory_space<vmem>>, %arg4: memref<4x32x32xbf16, #tpu.memory_space<vmem>>, %arg5: memref<4x1x32xf32, #tpu.memory_space<vmem>>, %arg6: memref<32x64xbf16, #tpu.memory_space<vmem>>, %arg7: memref<1x64xf32, #tpu.memory_space<vmem>>, %arg8: memref<64x32xbf16, #tpu.memory_space<vmem>>, %arg9: memref<1x32xf32, #tpu.memory_space<vmem>>, %arg10: memref<1x8x32xf32, #tpu.memory_space<vmem>>) attributes {dimension_semantics = [#tpu.dimension_semantics<parallel>], iteration_bounds = array<i64: 2>, scalar_prefetch = 0 : i64, scratch_operands = 0 : i64, tpu.core_type = #tpu.core_type<tc>, window_params = [{transform_indices = @transform_0, window_bounds = array<i64: 1, 8, 32>}, {pipeline_mode = #tpu.pipeline_mode<synchronous>, transform_indices = @transform_1, window_bounds = array<i64: 4, 3, 32>}, {pipeline_mode = #tpu.pipeline_mode<synchronous>, transform_indices = @transform_2, window_bounds = array<i64: 4, 1, 32>}, {pipeline_mode = #tpu.pipeline_mode<synchronous>, transform_indices = @transform_3, window_bounds = array<i64: 4, 32, 32>}, {pipeline_mode = #tpu.pipeline_mode<synchronous>, transform_indices = @transform_4, window_bounds = array<i64: 4, 1, 32>}, {pipeline_mode = #tpu.pipeline_mode<synchronous>, transform_indices = @transform_5, window_bounds = array<i64: 32, 64>}, {pipeline_mode = #tpu.pipeline_mode<synchronous>, transform_indices = @transform_6, window_bounds = array<i64: 1, 64>}, {pipeline_mode = #tpu.pipeline_mode<synchronous>, transform_indices = @transform_7, window_bounds = array<i64: 64, 32>}, {pipeline_mode = #tpu.pipeline_mode<synchronous>, transform_indices = @transform_8, window_bounds = array<i64: 1, 32>}, {transform_indices = @transform_9, window_bounds = array<i64: 1, 8, 32>}]} {
    %c0 = arith.constant 0 : index
    %c0_0 = arith.constant 0 : index
    %c0_1 = arith.constant 0 : index
    %0 = vector.load %arg1[%c0, %c0_0, %c0_1] : memref<1x8x32xf32, #tpu.memory_space<vmem>>, vector<1x8x32xf32>
    %1 = vector.shape_cast %0 : vector<1x8x32xf32> to vector<8x32xf32>
    %cst = arith.constant dense<0.000000e+00> : vector<8xf32>
    %2 = vector.multi_reduction <add>, %1, %cst [1] : vector<8x32xf32> to vector<8xf32>
    %3 = vector.shape_cast %2 : vector<8xf32> to vector<8x1xf32>
    %cst_2 = arith.constant 3.200000e+01 : f32
    %4 = vector.broadcast %cst_2 : f32 to vector<8x1xf32>
    %5 = arith.divf %3, %4 : vector<8x1xf32>
    %6 = arith.mulf %1, %1 : vector<8x32xf32>
    %cst_3 = arith.constant dense<0.000000e+00> : vector<8xf32>
    %7 = vector.multi_reduction <add>, %6, %cst_3 [1] : vector<8x32xf32> to vector<8xf32>
    %8 = vector.shape_cast %7 : vector<8xf32> to vector<8x1xf32>
    %cst_4 = arith.constant 3.200000e+01 : f32
    %9 = vector.broadcast %cst_4 : f32 to vector<8x1xf32>
    %10 = arith.divf %8, %9 : vector<8x1xf32>
    %11 = arith.mulf %5, %5 : vector<8x1xf32>
    %12 = arith.subf %10, %11 : vector<8x1xf32>
    %cst_5 = arith.constant 0.000000e+00 : f32
    %13 = vector.broadcast %cst_5 : f32 to vector<8x1xf32>
    %14 = arith.maximumf %12, %13 : vector<8x1xf32>
    %15 = vector.broadcast %5 : vector<8x1xf32> to vector<8x32xf32>
    %16 = arith.subf %1, %15 : vector<8x32xf32>
    %cst_6 = arith.constant 9.99999997E-7 : f32
    %17 = vector.broadcast %cst_6 : f32 to vector<8x1xf32>
    %18 = arith.addf %14, %17 : vector<8x1xf32>
    %19 = math.rsqrt %18 : vector<8x1xf32>
    %20 = vector.broadcast %19 : vector<8x1xf32> to vector<8x32xf32>
    %21 = arith.mulf %16, %20 : vector<8x32xf32>
    %cst_7 = arith.constant 0.000000e+00 : f32
    %22 = vector.broadcast %cst_7 : f32 to vector<1x32xf32>
    %23 = vector.extract_strided_slice %21 {offsets = [0, 0], sizes = [7, 32], strides = [1, 1]} : vector<8x32xf32> to vector<7x32xf32>
    %24 = tpu.concatenate %22, %23 in 0 : vector<1x32xf32>, vector<7x32xf32> -> vector<8x32xf32>
    %25 = vector.extract_strided_slice %21 {offsets = [1, 0], sizes = [7, 32], strides = [1, 1]} : vector<8x32xf32> to vector<7x32xf32>
    %26 = tpu.concatenate %25, %22 in 0 : vector<7x32xf32>, vector<1x32xf32> -> vector<8x32xf32>
    %c0_8 = arith.constant 0 : index
    %c0_9 = arith.constant 0 : index
    %c0_10 = arith.constant 0 : index
    %27 = vector.load %arg2[%c0_8, %c0_9, %c0_10] : memref<4x3x32xf32, #tpu.memory_space<vmem>>, vector<1x3x32xf32>
    %28 = vector.shape_cast %27 : vector<1x3x32xf32> to vector<3x32xf32>
    %29 = vector.extract_strided_slice %28 {offsets = [0, 0], sizes = [1, 32], strides = [1, 1]} : vector<3x32xf32> to vector<1x32xf32>
    %30 = vector.broadcast %29 : vector<1x32xf32> to vector<8x32xf32>
    %31 = arith.mulf %24, %30 : vector<8x32xf32>
    %32 = vector.extract_strided_slice %28 {offsets = [1, 0], sizes = [1, 32], strides = [1, 1]} : vector<3x32xf32> to vector<1x32xf32>
    %33 = vector.broadcast %32 : vector<1x32xf32> to vector<8x32xf32>
    %34 = arith.mulf %21, %33 : vector<8x32xf32>
    %35 = arith.addf %31, %34 : vector<8x32xf32>
    %36 = vector.extract_strided_slice %28 {offsets = [2, 0], sizes = [1, 32], strides = [1, 1]} : vector<3x32xf32> to vector<1x32xf32>
    %37 = vector.broadcast %36 : vector<1x32xf32> to vector<8x32xf32>
    %38 = arith.mulf %26, %37 : vector<8x32xf32>
    %39 = arith.addf %35, %38 : vector<8x32xf32>
    %c0_11 = arith.constant 0 : index
    %c0_12 = arith.constant 0 : index
    %c0_13 = arith.constant 0 : index
    %40 = vector.load %arg3[%c0_11, %c0_12, %c0_13] : memref<4x1x32xf32, #tpu.memory_space<vmem>>, vector<1x1x32xf32>
    %41 = vector.shape_cast %40 : vector<1x1x32xf32> to vector<1x32xf32>
    %42 = vector.broadcast %41 : vector<1x32xf32> to vector<8x32xf32>
    %43 = arith.addf %39, %42 : vector<8x32xf32>
    %44 = arith.truncf %43 : vector<8x32xf32> to vector<8x32xbf16>
    %c0_14 = arith.constant 0 : index
    %c0_15 = arith.constant 0 : index
    %c0_16 = arith.constant 0 : index
    %45 = vector.load %arg4[%c0_14, %c0_15, %c0_16] : memref<4x32x32xbf16, #tpu.memory_space<vmem>>, vector<1x32x32xbf16>
    %46 = vector.shape_cast %45 : vector<1x32x32xbf16> to vector<32x32xbf16>
    %cst_17 = arith.constant dense<0.000000e+00> : vector<8x32xf32>
    %47 = tpu.matmul %44, %46, %cst_17 {dimension_numbers = #tpu.dot_dimension_numbers<[1], [0], [0], [1], [0, 0, 1, 1], [], []>} : vector<8x32xbf16>, vector<32x32xbf16>, vector<8x32xf32> -> vector<8x32xf32>
    %c0_18 = arith.constant 0 : index
    %c0_19 = arith.constant 0 : index
    %c0_20 = arith.constant 0 : index
    %48 = vector.load %arg5[%c0_18, %c0_19, %c0_20] : memref<4x1x32xf32, #tpu.memory_space<vmem>>, vector<1x1x32xf32>
    %49 = vector.shape_cast %48 : vector<1x1x32xf32> to vector<1x32xf32>
    %50 = vector.broadcast %49 : vector<1x32xf32> to vector<8x32xf32>
    %51 = arith.addf %47, %50 : vector<8x32xf32>
    %52 = arith.addf %51, %1 : vector<8x32xf32>
    %cst_21 = arith.constant dense<0.000000e+00> : vector<8xf32>
    %53 = vector.multi_reduction <add>, %52, %cst_21 [1] : vector<8x32xf32> to vector<8xf32>
    %54 = vector.shape_cast %53 : vector<8xf32> to vector<8x1xf32>
    %cst_22 = arith.constant 3.200000e+01 : f32
    %55 = vector.broadcast %cst_22 : f32 to vector<8x1xf32>
    %56 = arith.divf %54, %55 : vector<8x1xf32>
    %57 = arith.mulf %52, %52 : vector<8x32xf32>
    %cst_23 = arith.constant dense<0.000000e+00> : vector<8xf32>
    %58 = vector.multi_reduction <add>, %57, %cst_23 [1] : vector<8x32xf32> to vector<8xf32>
    %59 = vector.shape_cast %58 : vector<8xf32> to vector<8x1xf32>
    %cst_24 = arith.constant 3.200000e+01 : f32
    %60 = vector.broadcast %cst_24 : f32 to vector<8x1xf32>
    %61 = arith.divf %59, %60 : vector<8x1xf32>
    %62 = arith.mulf %56, %56 : vector<8x1xf32>
    %63 = arith.subf %61, %62 : vector<8x1xf32>
    %cst_25 = arith.constant 0.000000e+00 : f32
    %64 = vector.broadcast %cst_25 : f32 to vector<8x1xf32>
    %65 = arith.maximumf %63, %64 : vector<8x1xf32>
    %66 = vector.broadcast %56 : vector<8x1xf32> to vector<8x32xf32>
    %67 = arith.subf %52, %66 : vector<8x32xf32>
    %cst_26 = arith.constant 9.99999997E-7 : f32
    %68 = vector.broadcast %cst_26 : f32 to vector<8x1xf32>
    %69 = arith.addf %65, %68 : vector<8x1xf32>
    %70 = math.rsqrt %69 : vector<8x1xf32>
    %71 = vector.broadcast %70 : vector<8x1xf32> to vector<8x32xf32>
    %72 = arith.mulf %67, %71 : vector<8x32xf32>
    %cst_27 = arith.constant 0.000000e+00 : f32
    %73 = vector.broadcast %cst_27 : f32 to vector<1x32xf32>
    %74 = vector.extract_strided_slice %72 {offsets = [0, 0], sizes = [7, 32], strides = [1, 1]} : vector<8x32xf32> to vector<7x32xf32>
    %75 = tpu.concatenate %73, %74 in 0 : vector<1x32xf32>, vector<7x32xf32> -> vector<8x32xf32>
    %76 = vector.extract_strided_slice %72 {offsets = [1, 0], sizes = [7, 32], strides = [1, 1]} : vector<8x32xf32> to vector<7x32xf32>
    %77 = tpu.concatenate %76, %73 in 0 : vector<7x32xf32>, vector<1x32xf32> -> vector<8x32xf32>
    %c1 = arith.constant 1 : index
    %c0_28 = arith.constant 0 : index
    %c0_29 = arith.constant 0 : index
    %78 = vector.load %arg2[%c1, %c0_28, %c0_29] : memref<4x3x32xf32, #tpu.memory_space<vmem>>, vector<1x3x32xf32>
    %79 = vector.shape_cast %78 : vector<1x3x32xf32> to vector<3x32xf32>
    %80 = vector.extract_strided_slice %79 {offsets = [0, 0], sizes = [1, 32], strides = [1, 1]} : vector<3x32xf32> to vector<1x32xf32>
    %81 = vector.broadcast %80 : vector<1x32xf32> to vector<8x32xf32>
    %82 = arith.mulf %75, %81 : vector<8x32xf32>
    %83 = vector.extract_strided_slice %79 {offsets = [1, 0], sizes = [1, 32], strides = [1, 1]} : vector<3x32xf32> to vector<1x32xf32>
    %84 = vector.broadcast %83 : vector<1x32xf32> to vector<8x32xf32>
    %85 = arith.mulf %72, %84 : vector<8x32xf32>
    %86 = arith.addf %82, %85 : vector<8x32xf32>
    %87 = vector.extract_strided_slice %79 {offsets = [2, 0], sizes = [1, 32], strides = [1, 1]} : vector<3x32xf32> to vector<1x32xf32>
    %88 = vector.broadcast %87 : vector<1x32xf32> to vector<8x32xf32>
    %89 = arith.mulf %77, %88 : vector<8x32xf32>
    %90 = arith.addf %86, %89 : vector<8x32xf32>
    %c1_30 = arith.constant 1 : index
    %c0_31 = arith.constant 0 : index
    %c0_32 = arith.constant 0 : index
    %91 = vector.load %arg3[%c1_30, %c0_31, %c0_32] : memref<4x1x32xf32, #tpu.memory_space<vmem>>, vector<1x1x32xf32>
    %92 = vector.shape_cast %91 : vector<1x1x32xf32> to vector<1x32xf32>
    %93 = vector.broadcast %92 : vector<1x32xf32> to vector<8x32xf32>
    %94 = arith.addf %90, %93 : vector<8x32xf32>
    %95 = arith.truncf %94 : vector<8x32xf32> to vector<8x32xbf16>
    %c1_33 = arith.constant 1 : index
    %c0_34 = arith.constant 0 : index
    %c0_35 = arith.constant 0 : index
    %96 = vector.load %arg4[%c1_33, %c0_34, %c0_35] : memref<4x32x32xbf16, #tpu.memory_space<vmem>>, vector<1x32x32xbf16>
    %97 = vector.shape_cast %96 : vector<1x32x32xbf16> to vector<32x32xbf16>
    %cst_36 = arith.constant dense<0.000000e+00> : vector<8x32xf32>
    %98 = tpu.matmul %95, %97, %cst_36 {dimension_numbers = #tpu.dot_dimension_numbers<[1], [0], [0], [1], [0, 0, 1, 1], [], []>} : vector<8x32xbf16>, vector<32x32xbf16>, vector<8x32xf32> -> vector<8x32xf32>
    %c1_37 = arith.constant 1 : index
    %c0_38 = arith.constant 0 : index
    %c0_39 = arith.constant 0 : index
    %99 = vector.load %arg5[%c1_37, %c0_38, %c0_39] : memref<4x1x32xf32, #tpu.memory_space<vmem>>, vector<1x1x32xf32>
    %100 = vector.shape_cast %99 : vector<1x1x32xf32> to vector<1x32xf32>
    %101 = vector.broadcast %100 : vector<1x32xf32> to vector<8x32xf32>
    %102 = arith.addf %98, %101 : vector<8x32xf32>
    %103 = arith.addf %102, %52 : vector<8x32xf32>
    %cst_40 = arith.constant dense<0.000000e+00> : vector<8xf32>
    %104 = vector.multi_reduction <add>, %103, %cst_40 [1] : vector<8x32xf32> to vector<8xf32>
    %105 = vector.shape_cast %104 : vector<8xf32> to vector<8x1xf32>
    %cst_41 = arith.constant 3.200000e+01 : f32
    %106 = vector.broadcast %cst_41 : f32 to vector<8x1xf32>
    %107 = arith.divf %105, %106 : vector<8x1xf32>
    %108 = arith.mulf %103, %103 : vector<8x32xf32>
    %cst_42 = arith.constant dense<0.000000e+00> : vector<8xf32>
    %109 = vector.multi_reduction <add>, %108, %cst_42 [1] : vector<8x32xf32> to vector<8xf32>
    %110 = vector.shape_cast %109 : vector<8xf32> to vector<8x1xf32>
    %cst_43 = arith.constant 3.200000e+01 : f32
    %111 = vector.broadcast %cst_43 : f32 to vector<8x1xf32>
    %112 = arith.divf %110, %111 : vector<8x1xf32>
    %113 = arith.mulf %107, %107 : vector<8x1xf32>
    %114 = arith.subf %112, %113 : vector<8x1xf32>
    %cst_44 = arith.constant 0.000000e+00 : f32
    %115 = vector.broadcast %cst_44 : f32 to vector<8x1xf32>
    %116 = arith.maximumf %114, %115 : vector<8x1xf32>
    %117 = vector.broadcast %107 : vector<8x1xf32> to vector<8x32xf32>
    %118 = arith.subf %103, %117 : vector<8x32xf32>
    %cst_45 = arith.constant 9.99999997E-7 : f32
    %119 = vector.broadcast %cst_45 : f32 to vector<8x1xf32>
    %120 = arith.addf %116, %119 : vector<8x1xf32>
    %121 = math.rsqrt %120 : vector<8x1xf32>
    %122 = vector.broadcast %121 : vector<8x1xf32> to vector<8x32xf32>
    %123 = arith.mulf %118, %122 : vector<8x32xf32>
    %cst_46 = arith.constant 0.000000e+00 : f32
    %124 = vector.broadcast %cst_46 : f32 to vector<1x32xf32>
    %125 = vector.extract_strided_slice %123 {offsets = [0, 0], sizes = [7, 32], strides = [1, 1]} : vector<8x32xf32> to vector<7x32xf32>
    %126 = tpu.concatenate %124, %125 in 0 : vector<1x32xf32>, vector<7x32xf32> -> vector<8x32xf32>
    %127 = vector.extract_strided_slice %123 {offsets = [1, 0], sizes = [7, 32], strides = [1, 1]} : vector<8x32xf32> to vector<7x32xf32>
    %128 = tpu.concatenate %127, %124 in 0 : vector<7x32xf32>, vector<1x32xf32> -> vector<8x32xf32>
    %c2 = arith.constant 2 : index
    %c0_47 = arith.constant 0 : index
    %c0_48 = arith.constant 0 : index
    %129 = vector.load %arg2[%c2, %c0_47, %c0_48] : memref<4x3x32xf32, #tpu.memory_space<vmem>>, vector<1x3x32xf32>
    %130 = vector.shape_cast %129 : vector<1x3x32xf32> to vector<3x32xf32>
    %131 = vector.extract_strided_slice %130 {offsets = [0, 0], sizes = [1, 32], strides = [1, 1]} : vector<3x32xf32> to vector<1x32xf32>
    %132 = vector.broadcast %131 : vector<1x32xf32> to vector<8x32xf32>
    %133 = arith.mulf %126, %132 : vector<8x32xf32>
    %134 = vector.extract_strided_slice %130 {offsets = [1, 0], sizes = [1, 32], strides = [1, 1]} : vector<3x32xf32> to vector<1x32xf32>
    %135 = vector.broadcast %134 : vector<1x32xf32> to vector<8x32xf32>
    %136 = arith.mulf %123, %135 : vector<8x32xf32>
    %137 = arith.addf %133, %136 : vector<8x32xf32>
    %138 = vector.extract_strided_slice %130 {offsets = [2, 0], sizes = [1, 32], strides = [1, 1]} : vector<3x32xf32> to vector<1x32xf32>
    %139 = vector.broadcast %138 : vector<1x32xf32> to vector<8x32xf32>
    %140 = arith.mulf %128, %139 : vector<8x32xf32>
    %141 = arith.addf %137, %140 : vector<8x32xf32>
    %c2_49 = arith.constant 2 : index
    %c0_50 = arith.constant 0 : index
    %c0_51 = arith.constant 0 : index
    %142 = vector.load %arg3[%c2_49, %c0_50, %c0_51] : memref<4x1x32xf32, #tpu.memory_space<vmem>>, vector<1x1x32xf32>
    %143 = vector.shape_cast %142 : vector<1x1x32xf32> to vector<1x32xf32>
    %144 = vector.broadcast %143 : vector<1x32xf32> to vector<8x32xf32>
    %145 = arith.addf %141, %144 : vector<8x32xf32>
    %146 = arith.truncf %145 : vector<8x32xf32> to vector<8x32xbf16>
    %c2_52 = arith.constant 2 : index
    %c0_53 = arith.constant 0 : index
    %c0_54 = arith.constant 0 : index
    %147 = vector.load %arg4[%c2_52, %c0_53, %c0_54] : memref<4x32x32xbf16, #tpu.memory_space<vmem>>, vector<1x32x32xbf16>
    %148 = vector.shape_cast %147 : vector<1x32x32xbf16> to vector<32x32xbf16>
    %cst_55 = arith.constant dense<0.000000e+00> : vector<8x32xf32>
    %149 = tpu.matmul %146, %148, %cst_55 {dimension_numbers = #tpu.dot_dimension_numbers<[1], [0], [0], [1], [0, 0, 1, 1], [], []>} : vector<8x32xbf16>, vector<32x32xbf16>, vector<8x32xf32> -> vector<8x32xf32>
    %c2_56 = arith.constant 2 : index
    %c0_57 = arith.constant 0 : index
    %c0_58 = arith.constant 0 : index
    %150 = vector.load %arg5[%c2_56, %c0_57, %c0_58] : memref<4x1x32xf32, #tpu.memory_space<vmem>>, vector<1x1x32xf32>
    %151 = vector.shape_cast %150 : vector<1x1x32xf32> to vector<1x32xf32>
    %152 = vector.broadcast %151 : vector<1x32xf32> to vector<8x32xf32>
    %153 = arith.addf %149, %152 : vector<8x32xf32>
    %154 = arith.addf %153, %103 : vector<8x32xf32>
    %cst_59 = arith.constant dense<0.000000e+00> : vector<8xf32>
    %155 = vector.multi_reduction <add>, %154, %cst_59 [1] : vector<8x32xf32> to vector<8xf32>
    %156 = vector.shape_cast %155 : vector<8xf32> to vector<8x1xf32>
    %cst_60 = arith.constant 3.200000e+01 : f32
    %157 = vector.broadcast %cst_60 : f32 to vector<8x1xf32>
    %158 = arith.divf %156, %157 : vector<8x1xf32>
    %159 = arith.mulf %154, %154 : vector<8x32xf32>
    %cst_61 = arith.constant dense<0.000000e+00> : vector<8xf32>
    %160 = vector.multi_reduction <add>, %159, %cst_61 [1] : vector<8x32xf32> to vector<8xf32>
    %161 = vector.shape_cast %160 : vector<8xf32> to vector<8x1xf32>
    %cst_62 = arith.constant 3.200000e+01 : f32
    %162 = vector.broadcast %cst_62 : f32 to vector<8x1xf32>
    %163 = arith.divf %161, %162 : vector<8x1xf32>
    %164 = arith.mulf %158, %158 : vector<8x1xf32>
    %165 = arith.subf %163, %164 : vector<8x1xf32>
    %cst_63 = arith.constant 0.000000e+00 : f32
    %166 = vector.broadcast %cst_63 : f32 to vector<8x1xf32>
    %167 = arith.maximumf %165, %166 : vector<8x1xf32>
    %168 = vector.broadcast %158 : vector<8x1xf32> to vector<8x32xf32>
    %169 = arith.subf %154, %168 : vector<8x32xf32>
    %cst_64 = arith.constant 9.99999997E-7 : f32
    %170 = vector.broadcast %cst_64 : f32 to vector<8x1xf32>
    %171 = arith.addf %167, %170 : vector<8x1xf32>
    %172 = math.rsqrt %171 : vector<8x1xf32>
    %173 = vector.broadcast %172 : vector<8x1xf32> to vector<8x32xf32>
    %174 = arith.mulf %169, %173 : vector<8x32xf32>
    %cst_65 = arith.constant 0.000000e+00 : f32
    %175 = vector.broadcast %cst_65 : f32 to vector<1x32xf32>
    %176 = vector.extract_strided_slice %174 {offsets = [0, 0], sizes = [7, 32], strides = [1, 1]} : vector<8x32xf32> to vector<7x32xf32>
    %177 = tpu.concatenate %175, %176 in 0 : vector<1x32xf32>, vector<7x32xf32> -> vector<8x32xf32>
    %178 = vector.extract_strided_slice %174 {offsets = [1, 0], sizes = [7, 32], strides = [1, 1]} : vector<8x32xf32> to vector<7x32xf32>
    %179 = tpu.concatenate %178, %175 in 0 : vector<7x32xf32>, vector<1x32xf32> -> vector<8x32xf32>
    %c3 = arith.constant 3 : index
    %c0_66 = arith.constant 0 : index
    %c0_67 = arith.constant 0 : index
    %180 = vector.load %arg2[%c3, %c0_66, %c0_67] : memref<4x3x32xf32, #tpu.memory_space<vmem>>, vector<1x3x32xf32>
    %181 = vector.shape_cast %180 : vector<1x3x32xf32> to vector<3x32xf32>
    %182 = vector.extract_strided_slice %181 {offsets = [0, 0], sizes = [1, 32], strides = [1, 1]} : vector<3x32xf32> to vector<1x32xf32>
    %183 = vector.broadcast %182 : vector<1x32xf32> to vector<8x32xf32>
    %184 = arith.mulf %177, %183 : vector<8x32xf32>
    %185 = vector.extract_strided_slice %181 {offsets = [1, 0], sizes = [1, 32], strides = [1, 1]} : vector<3x32xf32> to vector<1x32xf32>
    %186 = vector.broadcast %185 : vector<1x32xf32> to vector<8x32xf32>
    %187 = arith.mulf %174, %186 : vector<8x32xf32>
    %188 = arith.addf %184, %187 : vector<8x32xf32>
    %189 = vector.extract_strided_slice %181 {offsets = [2, 0], sizes = [1, 32], strides = [1, 1]} : vector<3x32xf32> to vector<1x32xf32>
    %190 = vector.broadcast %189 : vector<1x32xf32> to vector<8x32xf32>
    %191 = arith.mulf %179, %190 : vector<8x32xf32>
    %192 = arith.addf %188, %191 : vector<8x32xf32>
    %c3_68 = arith.constant 3 : index
    %c0_69 = arith.constant 0 : index
    %c0_70 = arith.constant 0 : index
    %193 = vector.load %arg3[%c3_68, %c0_69, %c0_70] : memref<4x1x32xf32, #tpu.memory_space<vmem>>, vector<1x1x32xf32>
    %194 = vector.shape_cast %193 : vector<1x1x32xf32> to vector<1x32xf32>
    %195 = vector.broadcast %194 : vector<1x32xf32> to vector<8x32xf32>
    %196 = arith.addf %192, %195 : vector<8x32xf32>
    %197 = arith.truncf %196 : vector<8x32xf32> to vector<8x32xbf16>
    %c3_71 = arith.constant 3 : index
    %c0_72 = arith.constant 0 : index
    %c0_73 = arith.constant 0 : index
    %198 = vector.load %arg4[%c3_71, %c0_72, %c0_73] : memref<4x32x32xbf16, #tpu.memory_space<vmem>>, vector<1x32x32xbf16>
    %199 = vector.shape_cast %198 : vector<1x32x32xbf16> to vector<32x32xbf16>
    %cst_74 = arith.constant dense<0.000000e+00> : vector<8x32xf32>
    %200 = tpu.matmul %197, %199, %cst_74 {dimension_numbers = #tpu.dot_dimension_numbers<[1], [0], [0], [1], [0, 0, 1, 1], [], []>} : vector<8x32xbf16>, vector<32x32xbf16>, vector<8x32xf32> -> vector<8x32xf32>
    %c3_75 = arith.constant 3 : index
    %c0_76 = arith.constant 0 : index
    %c0_77 = arith.constant 0 : index
    %201 = vector.load %arg5[%c3_75, %c0_76, %c0_77] : memref<4x1x32xf32, #tpu.memory_space<vmem>>, vector<1x1x32xf32>
    %202 = vector.shape_cast %201 : vector<1x1x32xf32> to vector<1x32xf32>
    %203 = vector.broadcast %202 : vector<1x32xf32> to vector<8x32xf32>
    %204 = arith.addf %200, %203 : vector<8x32xf32>
    %205 = arith.addf %204, %154 : vector<8x32xf32>
    %cst_78 = arith.constant dense<0.000000e+00> : vector<8xf32>
    %206 = vector.multi_reduction <add>, %205, %cst_78 [1] : vector<8x32xf32> to vector<8xf32>
    %207 = vector.shape_cast %206 : vector<8xf32> to vector<8x1xf32>
    %cst_79 = arith.constant 3.200000e+01 : f32
    %208 = vector.broadcast %cst_79 : f32 to vector<8x1xf32>
    %209 = arith.divf %207, %208 : vector<8x1xf32>
    %210 = arith.mulf %205, %205 : vector<8x32xf32>
    %cst_80 = arith.constant dense<0.000000e+00> : vector<8xf32>
    %211 = vector.multi_reduction <add>, %210, %cst_80 [1] : vector<8x32xf32> to vector<8xf32>
    %212 = vector.shape_cast %211 : vector<8xf32> to vector<8x1xf32>
    %cst_81 = arith.constant 3.200000e+01 : f32
    %213 = vector.broadcast %cst_81 : f32 to vector<8x1xf32>
    %214 = arith.divf %212, %213 : vector<8x1xf32>
    %215 = arith.mulf %209, %209 : vector<8x1xf32>
    %216 = arith.subf %214, %215 : vector<8x1xf32>
    %cst_82 = arith.constant 0.000000e+00 : f32
    %217 = vector.broadcast %cst_82 : f32 to vector<8x1xf32>
    %218 = arith.maximumf %216, %217 : vector<8x1xf32>
    %219 = vector.broadcast %209 : vector<8x1xf32> to vector<8x32xf32>
    %220 = arith.subf %205, %219 : vector<8x32xf32>
    %cst_83 = arith.constant 9.99999997E-7 : f32
    %221 = vector.broadcast %cst_83 : f32 to vector<8x1xf32>
    %222 = arith.addf %218, %221 : vector<8x1xf32>
    %223 = math.rsqrt %222 : vector<8x1xf32>
    %224 = vector.broadcast %223 : vector<8x1xf32> to vector<8x32xf32>
    %225 = arith.mulf %220, %224 : vector<8x32xf32>
    %226 = arith.truncf %225 : vector<8x32xf32> to vector<8x32xbf16>
    %cst_84 = arith.constant 0xFF800000 : f32
    %227 = vector.broadcast %cst_84 : f32 to vector<8x1xf32>
    %cst_85 = arith.constant 0.000000e+00 : f32
    %228 = vector.broadcast %cst_85 : f32 to vector<8x1xf32>
    %cst_86 = arith.constant 0.000000e+00 : f32
    %229 = vector.broadcast %cst_86 : f32 to vector<8x32xf32>
    %cst_87 = arith.constant dense<0.000000e+00> : vector<8x8xf32>
    %230 = tpu.matmul %226, %226, %cst_87 {dimension_numbers = #tpu.dot_dimension_numbers<[1], [1], [0], [0], [0, 0, 1, 0], [], []>} : vector<8x32xbf16>, vector<8x32xbf16>, vector<8x8xf32> -> vector<8x8xf32>
    %cst_88 = arith.constant dense<0xFF800000> : vector<8xf32>
    %231 = vector.multi_reduction <maximumf>, %230, %cst_88 [1] : vector<8x8xf32> to vector<8xf32>
    %232 = vector.shape_cast %231 : vector<8xf32> to vector<8x1xf32>
    %233 = arith.maximumf %227, %232 : vector<8x1xf32>
    %234 = arith.subf %227, %233 : vector<8x1xf32>
    %235 = math.exp %234 : vector<8x1xf32>
    %236 = vector.broadcast %233 : vector<8x1xf32> to vector<8x8xf32>
    %237 = arith.subf %230, %236 : vector<8x8xf32>
    %238 = math.exp %237 : vector<8x8xf32>
    %239 = arith.mulf %235, %228 : vector<8x1xf32>
    %cst_89 = arith.constant dense<0.000000e+00> : vector<8xf32>
    %240 = vector.multi_reduction <add>, %238, %cst_89 [1] : vector<8x8xf32> to vector<8xf32>
    %241 = vector.shape_cast %240 : vector<8xf32> to vector<8x1xf32>
    %242 = arith.addf %239, %241 : vector<8x1xf32>
    %243 = vector.broadcast %235 : vector<8x1xf32> to vector<8x32xf32>
    %244 = arith.mulf %243, %229 : vector<8x32xf32>
    %245 = arith.truncf %238 : vector<8x8xf32> to vector<8x8xbf16>
    %cst_90 = arith.constant dense<0.000000e+00> : vector<8x32xf32>
    %246 = tpu.matmul %245, %226, %cst_90 {dimension_numbers = #tpu.dot_dimension_numbers<[1], [0], [0], [1], [0, 0, 1, 1], [], []>} : vector<8x8xbf16>, vector<8x32xbf16>, vector<8x32xf32> -> vector<8x32xf32>
    %247 = arith.addf %244, %246 : vector<8x32xf32>
    %248 = tpu.reciprocal %242 {approx = true} : vector<8x1xf32> -> vector<8x1xf32>
    %249 = vector.broadcast %248 : vector<8x1xf32> to vector<8x32xf32>
    %250 = arith.mulf %247, %249 : vector<8x32xf32>
    %251 = arith.addf %250, %205 : vector<8x32xf32>
    %cst_91 = arith.constant dense<0.000000e+00> : vector<8xf32>
    %252 = vector.multi_reduction <add>, %251, %cst_91 [1] : vector<8x32xf32> to vector<8xf32>
    %253 = vector.shape_cast %252 : vector<8xf32> to vector<8x1xf32>
    %cst_92 = arith.constant 3.200000e+01 : f32
    %254 = vector.broadcast %cst_92 : f32 to vector<8x1xf32>
    %255 = arith.divf %253, %254 : vector<8x1xf32>
    %256 = arith.mulf %251, %251 : vector<8x32xf32>
    %cst_93 = arith.constant dense<0.000000e+00> : vector<8xf32>
    %257 = vector.multi_reduction <add>, %256, %cst_93 [1] : vector<8x32xf32> to vector<8xf32>
    %258 = vector.shape_cast %257 : vector<8xf32> to vector<8x1xf32>
    %cst_94 = arith.constant 3.200000e+01 : f32
    %259 = vector.broadcast %cst_94 : f32 to vector<8x1xf32>
    %260 = arith.divf %258, %259 : vector<8x1xf32>
    %261 = arith.mulf %255, %255 : vector<8x1xf32>
    %262 = arith.subf %260, %261 : vector<8x1xf32>
    %cst_95 = arith.constant 0.000000e+00 : f32
    %263 = vector.broadcast %cst_95 : f32 to vector<8x1xf32>
    %264 = arith.maximumf %262, %263 : vector<8x1xf32>
    %265 = vector.broadcast %255 : vector<8x1xf32> to vector<8x32xf32>
    %266 = arith.subf %251, %265 : vector<8x32xf32>
    %cst_96 = arith.constant 9.99999997E-7 : f32
    %267 = vector.broadcast %cst_96 : f32 to vector<8x1xf32>
    %268 = arith.addf %264, %267 : vector<8x1xf32>
    %269 = math.rsqrt %268 : vector<8x1xf32>
    %270 = vector.broadcast %269 : vector<8x1xf32> to vector<8x32xf32>
    %271 = arith.mulf %266, %270 : vector<8x32xf32>
    %272 = arith.truncf %271 : vector<8x32xf32> to vector<8x32xbf16>
    %c0_97 = arith.constant 0 : index
    %c0_98 = arith.constant 0 : index
    %273 = vector.load %arg6[%c0_97, %c0_98] : memref<32x64xbf16, #tpu.memory_space<vmem>>, vector<32x64xbf16>
    %cst_99 = arith.constant dense<0.000000e+00> : vector<8x64xf32>
    %274 = tpu.matmul %272, %273, %cst_99 {dimension_numbers = #tpu.dot_dimension_numbers<[1], [0], [0], [1], [0, 0, 1, 1], [], []>} : vector<8x32xbf16>, vector<32x64xbf16>, vector<8x64xf32> -> vector<8x64xf32>
    %c0_100 = arith.constant 0 : index
    %c0_101 = arith.constant 0 : index
    %275 = vector.load %arg7[%c0_100, %c0_101] : memref<1x64xf32, #tpu.memory_space<vmem>>, vector<1x64xf32>
    %276 = vector.broadcast %275 : vector<1x64xf32> to vector<8x64xf32>
    %277 = arith.addf %274, %276 : vector<8x64xf32>
    %cst_102 = arith.constant 0.000000e+00 : f32
    %278 = vector.broadcast %cst_102 : f32 to vector<8x64xf32>
    %279 = arith.maximumf %277, %278 : vector<8x64xf32>
    %280 = arith.truncf %279 : vector<8x64xf32> to vector<8x64xbf16>
    %c0_103 = arith.constant 0 : index
    %c0_104 = arith.constant 0 : index
    %281 = vector.load %arg8[%c0_103, %c0_104] : memref<64x32xbf16, #tpu.memory_space<vmem>>, vector<64x32xbf16>
    %cst_105 = arith.constant dense<0.000000e+00> : vector<8x32xf32>
    %282 = tpu.matmul %280, %281, %cst_105 {dimension_numbers = #tpu.dot_dimension_numbers<[1], [0], [0], [1], [0, 0, 1, 1], [], []>} : vector<8x64xbf16>, vector<64x32xbf16>, vector<8x32xf32> -> vector<8x32xf32>
    %c0_106 = arith.constant 0 : index
    %c0_107 = arith.constant 0 : index
    %283 = vector.load %arg9[%c0_106, %c0_107] : memref<1x32xf32, #tpu.memory_space<vmem>>, vector<1x32xf32>
    %284 = vector.broadcast %283 : vector<1x32xf32> to vector<8x32xf32>
    %285 = arith.addf %282, %284 : vector<8x32xf32>
    %286 = arith.addf %285, %251 : vector<8x32xf32>
    %c0_108 = arith.constant 0 : index
    %c0_109 = arith.constant 0 : index
    %c0_110 = arith.constant 0 : index
    %287 = vector.load %arg10[%c0_108, %c0_109, %c0_110] : memref<1x8x32xf32, #tpu.memory_space<vmem>>, vector<1x8x32xf32>
    %288 = vector.shape_cast %287 : vector<1x8x32xf32> to vector<8x32xf32>
    %289 = vector.shape_cast %286 : vector<8x32xf32> to vector<1x8x32xf32>
    tpu.vector_store %arg10[%c0_108, %c0_109, %c0_110], %289 {strides = array<i32>} : memref<1x8x32xf32, #tpu.memory_space<vmem>>, vector<1x8x32xf32>,
    return
  }
  func.func @transform_0(%arg0: i32) -> (i32, i32, i32) {
    %c0_i32 = arith.constant 0 : i32
    %c0_i32_0 = arith.constant 0 : i32
    %c0_i32_1 = arith.constant 0 : i32
    return %arg0, %c0_i32, %c0_i32_0 : i32, i32, i32
  }
  func.func @transform_1(%arg0: i32) -> (i32, i32, i32) {
    %c0_i32 = arith.constant 0 : i32
    %c0_i32_0 = arith.constant 0 : i32
    %c0_i32_1 = arith.constant 0 : i32
    %c0_i32_2 = arith.constant 0 : i32
    return %c0_i32, %c0_i32_0, %c0_i32_1 : i32, i32, i32
  }
  func.func @transform_2(%arg0: i32) -> (i32, i32, i32) {
    %c0_i32 = arith.constant 0 : i32
    %c0_i32_0 = arith.constant 0 : i32
    %c0_i32_1 = arith.constant 0 : i32
    %c0_i32_2 = arith.constant 0 : i32
    return %c0_i32, %c0_i32_0, %c0_i32_1 : i32, i32, i32
  }
  func.func @transform_3(%arg0: i32) -> (i32, i32, i32) {
    %c0_i32 = arith.constant 0 : i32
    %c0_i32_0 = arith.constant 0 : i32
    %c0_i32_1 = arith.constant 0 : i32
    %c0_i32_2 = arith.constant 0 : i32
    return %c0_i32, %c0_i32_0, %c0_i32_1 : i32, i32, i32
  }
  func.func @transform_4(%arg0: i32) -> (i32, i32, i32) {
    %c0_i32 = arith.constant 0 : i32
    %c0_i32_0 = arith.constant 0 : i32
    %c0_i32_1 = arith.constant 0 : i32
    %c0_i32_2 = arith.constant 0 : i32
    return %c0_i32, %c0_i32_0, %c0_i32_1 : i32, i32, i32
  }
  func.func @transform_5(%arg0: i32) -> (i32, i32) {
    %c0_i32 = arith.constant 0 : i32
    %c0_i32_0 = arith.constant 0 : i32
    %c0_i32_1 = arith.constant 0 : i32
    return %c0_i32, %c0_i32_0 : i32, i32
  }
  func.func @transform_6(%arg0: i32) -> (i32, i32) {
    %c0_i32 = arith.constant 0 : i32
    %c0_i32_0 = arith.constant 0 : i32
    %c0_i32_1 = arith.constant 0 : i32
    return %c0_i32, %c0_i32_0 : i32, i32
  }
  func.func @transform_7(%arg0: i32) -> (i32, i32) {
    %c0_i32 = arith.constant 0 : i32
    %c0_i32_0 = arith.constant 0 : i32
    %c0_i32_1 = arith.constant 0 : i32
    return %c0_i32, %c0_i32_0 : i32, i32
  }
  func.func @transform_8(%arg0: i32) -> (i32, i32) {
    %c0_i32 = arith.constant 0 : i32
    %c0_i32_0 = arith.constant 0 : i32
    %c0_i32_1 = arith.constant 0 : i32
    return %c0_i32, %c0_i32_0 : i32, i32
  }
  func.func @transform_9(%arg0: i32) -> (i32, i32, i32) {
    %c0_i32 = arith.constant 0 : i32
    %c0_i32_0 = arith.constant 0 : i32
    %c0_i32_1 = arith.constant 0 : i32
    return %arg0, %c0_i32, %c0_i32_0 : i32, i32, i32
  }
}

</mosaic_0001>

<bundles_post_ra>
// kernel: tpu_custom_call.1
= control target key start
LH: loop header
LB: loop body
LE: loop exit
PB: predicated region body
PF: predicated region fallthrough
CT: control target
= control target key end

     0   :  { %6 = vsyncpa [#allocation3], 0  ;;  %s125_s0 = inlined_call_operand.hbm [shape: f32[8,128], index: 0, kind: input, shape index: {}]   ;;  %s126_s1 = inlined_call_operand.hbm [shape: f32[8,128], index: 1, kind: output, shape index: {}]  }
   0x1   :  { %7 = vsyncpa [#allocation4], 0  ;;  %s89_s6 = smov [#allocation2]   ;;  %s41_s10 = scalar_lea.hbm %s125_s0, 128 }
   0x2   :  { %s14_s7 = sshll.u32 %s89_s6, 4  ;;  %p42_p0 = scmp.ne.s32.totalorder %s125_s0, %s41_s10  ;;  %s15_s7 = int_to_ptr.vmem [resolvable:$true] %s14_s7 }
   0x3   :  { %p45_p1 = scmp.lt.u32.totalorder %s41_s10, %s125_s0 }
   0x5   :  { %p47_p2 = pnand %p45_p1, %p42_p0 }
   0x7   :  { %50 = shalt.err (!%p47_p2)
}
   0x8   :  { %s51_s15 = scalar_lea.vmem %s15_s7, 128  ;;  %p56_p4 = scmp.lt.s32.totalorder %s15_s7, %s15_s7 }
   0x9   :  { %p52_p3 = scmp.ne.s32.totalorder %s15_s7, %s51_s15  ;;  %p57_p5 = scmp.lt.s32.totalorder %s51_s15, %s51_s15 }
   0xb   :  { %p58_p6 = por %p57_p5, %p56_p4 }
   0xd   :  { %p59_p7 = pnand %p58_p6, %p52_p3 }
   0xf   :  { %62 = shalt.err (!%p59_p7)
}
  0x10   :  { %17 = dma.hbm_to_vmem [thread:$0]  %s125_s0, 128, %s15_s7, [#allocation3]  }
  0x11   :  { %85 = dma.done.wait [#allocation3], 128  }
  0x12   :  { %86 = vsyncadd [#allocation3], 4294967168  ;;  %s90_s18 = smov [#allocation5]   ;;  %v21_v0 = vld [vmem:[#allocation2] sm:$0xff] }
  0x13   :  { %s30_s19 = sshll.u32 %s90_s18, 4  ;;  %v22_v1 = vrot.slane %v21_v0, 7  ;;  %s31_s19 = int_to_ptr.vmem [resolvable:$true] %s30_s19 }
  0x14   :  { %s63_s20 = scalar_lea.vmem %s31_s19, 128  ;;  %p68_p9 = scmp.lt.s32.totalorder %s31_s19, %s31_s19 }
  0x15   :  { %23 = vst [vmem:[#allocation5] sm:$0xff] %v22_v1  ;;  %p64_p8 = scmp.ne.s32.totalorder %s31_s19, %s63_s20  ;;  %p69_p10 = scmp.lt.s32.totalorder %s63_s20, %s63_s20 }
  0x17   :  { %p70_p11 = por %p69_p10, %p68_p9 }
  0x19   :  { %p71_p12 = pnand %p70_p11, %p64_p8 }
  0x1b   :  { %74 = shalt.err (!%p71_p12)
}
  0x1c   :  { %s75_s23 = scalar_lea.hbm %s126_s1, 128 }
  0x1d   :  { %p76_p13 = scmp.ne.s32.totalorder %s126_s1, %s75_s23  ;;  %p79_p0 = scmp.lt.u32.totalorder %s75_s23, %s126_s1 }
  0x1f   :  { %p81_p1 = pnand %p79_p0, %p76_p13 }
  0x21   :  { %84 = shalt.err (!%p81_p1)
}
  0x22   :  { %33 = dma.vmem_to_hbm [thread:$0]  %s31_s19, 128, %s126_s1, [#allocation4]  }
  0x23   :  { %87 = dma.done.wait [#allocation4], 128  }
  0x24   :  { %88 = vsyncadd [#allocation4], 4294967168 }
  0x25   :  { %37 = vsyncpa [#allocation3], 1 }
  0x26   :  { %38 = vsyncpa [#allocation4], 1 }

// kernel: tpu_custom_call.1
= control target key start
LH: loop header
LB: loop body
LE: loop exit
PB: predicated region body
PF: predicated region fallthrough
CT: control target
= control target key end

     0   :  { %s2573_s0 = inlined_call_operand.hbm [shape: f32[2,8,32], index: 0, kind: input, shape index: {}]   ;;  %s2574_s1 = inlined_call_operand.hbm [shape: f32[4,3,32], index: 1, kind: input, shape index: {}]   ;;  %s2575_s2 = inlined_call_operand.hbm [shape: f32[4,1,32], index: 2, kind: input, shape index: {}]   ;;  %s2576_s3 = inlined_call_operand.hbm [shape: bf16[4,32,32], index: 3, kind: input, shape index: {}]   ;;  %s2577_s4 = inlined_call_operand.hbm [shape: f32[4,1,32], index: 4, kind: input, shape index: {}]   ;;  %s2578_s5 = inlined_call_operand.hbm [shape: bf16[32,64], index: 5, kind: input, shape index: {}]   ;;  %s2579_s6 = inlined_call_operand.hbm [shape: f32[1,64], index: 6, kind: input, shape index: {}]   ;;  %s2580_s7 = inlined_call_operand.hbm [shape: bf16[64,32], index: 7, kind: input, shape index: {}]   ;;  %s2581_s8 = inlined_call_operand.hbm [shape: f32[1,32], index: 8, kind: input, shape index: {}]   ;;  %s2582_s9 = inlined_call_operand.hbm [shape: f32[2,8,32], index: 9, kind: output, shape index: {}]  }
   0x1   :  { %2587 = sst [smem:[#allocation24_spill]] %s2574_s1 }
   0x2   :  { %2588 = sst [smem:[#allocation25_spill]] %s2576_s3 }
   0x3   :  { %2589 = sst [smem:[#allocation26_spill]] %s2582_s9 }
   0x4   :  { %14 = vsyncpa [#allocation3], 0 }
   0x5   :  { %16 = vsyncpa [#allocation3 + $0x1], 0 }
   0x6   :  { %17 = vsyncpa [#allocation6], 0 }
   0x7   :  { %18 = vsyncpa [#allocation9], 0 }
   0x8   :  { %19 = vsyncpa [#allocation12], 0 }
   0x9   :  { %20 = vsyncpa [#allocation15], 0 }
   0xa   :  { %21 = vsyncpa [#allocation4], 0 }
   0xb   :  { %23 = vsyncpa [#allocation4 + $0x1], 0  ;;  %s2119_s30 = smov 0   ;;  %s2121_s10 = smov 0  }
   0xc   :  { %s2123_s11 = smov 0   ;;  %s2125_s12 = smov 0  }
   0xd LB: > { %s2053_s13 = smov [#allocation5]   ;;  %s2140_s15 = sadd.s32 4294967295, %s2051_s12   ;;  %s2051_s12 = sphi %s2125_s12, %s2617_s12   ;;  %s2047_s11 = sphi %s2123_s11, %s2616_s11   ;;  %s2043_s10 = sphi %s2121_s10, %s2615_s10   ;;  %s2039_s30 = sphi %s2119_s30, %s2614_s30  }
   0xe   : > { %s266_s14 = sshll.u32 %s2053_s13, 4  ;;  %p1403_p0 = scmp.ge.s32.totalorder %s2051_s12, 1  ;;  %s2145_s14 = int_to_ptr.vmem [resolvable:$true] %s266_s14 }
   0xf   : > { %p2584_p1 = scmp.eq.s32.totalorder %s2140_s15, 0  ;;  %p254_p2 = scmp.lt.s32.totalorder %s2051_s12, 3 }
  0x10   : > { %s2054_s17 = smov [#allocation8]   ;;  %s2055_s20 = smov [#allocation11]  }
  0x11   : > { %p2147_p3 = pnand %p1403_p0, %p254_p2  ;;  %s292_s18 = sshll.u32 %s2054_s17, 4  ;;  %s2160_s18 = int_to_ptr.vmem [resolvable:$true] %s292_s18 }
  0x12   : > { %s318_s21 = sshll.u32 %s2055_s20, 4  ;;  %s2592_s1 = sld [smem:[#allocation24_spill]]  ;;  %s2162_s21 = int_to_ptr.vmem [resolvable:$true] %s318_s21 }
  0x13   : > { %s2590_s16 = scalar_select %p2147_p3, 1, 0 }
  0x14   : > { %p1586_p5 = pneg %p2147_p3 }
  0x16   : > { %p2156_p6 = pnand %p1586_p5, %p2584_p1 }
  0x18   : > { %s1715_s24 = scalar_lea.hbm %s2592_s1, 256  ;;  %p2172_p8 = pneg %p2156_p6 }
  0x19   : > { %p1716_p7 = scmp.ne.s32.totalorder %s2592_s1, %s1715_s24  ;;  %p1722_p11 = scmp.lt.u32.totalorder %s1715_s24, %s2592_s1 }
  0x1b   : > { %p1718_p9 = pnand %p2172_p8, %p1716_p7 }
  0x1d   : > { %p1719_p10 = pneg %p1718_p9 }
  0x1f   : > { %p1724_p12 = pnand %p1722_p11, %p1719_p10 }
  0x21   : > { %1727 = shalt.err (!%p1724_p12)
}
  0x22   : > { %s1728_s13 = scalar_lea.vmem %s2145_s14, 256  ;;  %p1736_p5 = scmp.lt.s32.totalorder %s2145_s14, %s2145_s14 }
  0x23   : > { %p1729_p13 = scmp.ne.s32.totalorder %s2145_s14, %s1728_s13  ;;  %p1737_p4 = scmp.lt.s32.totalorder %s1728_s13, %s1728_s13 }
  0x25   : > { %p1731_p0 = pnand %p1729_p13, %p2172_p8  ;;  %p1738_p7 = por %p1737_p4, %p1736_p5 }
  0x27   : > { %p1732_p2 = pneg %p1731_p0 }
  0x29   : > { %p1739_p9 = pnand %p1738_p7, %p1732_p2 }
  0x2b   : > { %1742 = shalt.err (!%p1739_p9)
}
  0x2c   : > { %s2056_s17 = smov 64   ;;  %s2057_s20 = smov 4  }
  0x2d   : > { %1589 = dma.hbm_to_vmem [thread:$0]  (!%p2156_p6), %s2592_s1, 256, %s2145_s14, [#allocation6], %s2056_s17, %s2056_s17, %s2057_s20  }
  0x2e   : > { %s2594_s3 = sld [smem:[#allocation25_spill]] }
  0x34   : > { %s1743_s26 = scalar_lea.hbm %s2594_s3, 1024 }
  0x35   : > { %p1744_p4 = scmp.ne.s32.totalorder %s2594_s3, %s1743_s26  ;;  %p1750_p12 = scmp.lt.u32.totalorder %s1743_s26, %s2594_s3 }
  0x37   : > { %p1746_p10 = pnand %p1744_p4, %p2172_p8 }
  0x39   : > { %p1747_p11 = pneg %p1746_p10 }
  0x3b   : > { %p1752_p13 = pnand %p1750_p12, %p1747_p11 }
  0x3d   : > { %1755 = shalt.err (!%p1752_p13)
}
  0x3e   : > { %s1756_s14 = scalar_lea.vmem %s2160_s18, 1024  ;;  %p1764_p7 = scmp.lt.s32.totalorder %s2160_s18, %s2160_s18 }
  0x3f   : > { %p1757_p0 = scmp.ne.s32.totalorder %s2160_s18, %s1756_s14  ;;  %p1765_p9 = scmp.lt.s32.totalorder %s1756_s14, %s1756_s14 }
  0x41   : > { %p1759_p2 = pnand %p1757_p0, %p2172_p8  ;;  %p1766_p4 = por %p1765_p9, %p1764_p7 }
  0x43   : > { %p1760_p5 = pneg %p1759_p2 }
  0x45   : > { %p1767_p10 = pnand %p1766_p4, %p1760_p5 }
  0x47   : > { %1770 = shalt.err (!%p1767_p10)
}
  0x48   : > { %1595 = dma.hbm_to_vmem [thread:$0]  (!%p2156_p6), %s2594_s3, 1024, %s2160_s18, [#allocation9], %s2056_s17, %s2056_s17, %s2057_s20  }
  0x49   : > { %s1771_s25 = scalar_lea.hbm %s2578_s5, 256 }
  0x4a   : > { %p1772_p11 = scmp.ne.s32.totalorder %s2578_s5, %s1771_s25  ;;  %p1778_p0 = scmp.lt.u32.totalorder %s1771_s25, %s2578_s5 }
  0x4c   : > { %p1774_p12 = pnand %p1772_p11, %p2172_p8 }
  0x4e   : > { %p1775_p13 = pneg %p1774_p12 }
  0x50   : > { %p1780_p2 = pnand %p1778_p0, %p1775_p13 }
  0x52   : > { %1783 = shalt.err (!%p1780_p2)
}
  0x53   : > { %s1784_s18 = scalar_lea.vmem %s2162_s21, 256  ;;  %p1792_p4 = scmp.lt.s32.totalorder %s2162_s21, %s2162_s21 }
  0x54   : > { %p1785_p5 = scmp.ne.s32.totalorder %s2162_s21, %s1784_s18  ;;  %p1793_p10 = scmp.lt.s32.totalorder %s1784_s18, %s1784_s18 }
  0x56   : > { %p1787_p7 = pnand %p1785_p5, %p2172_p8  ;;  %p1794_p11 = por %p1793_p10, %p1792_p4 }
  0x58   : > { %p1788_p9 = pneg %p1787_p7 }
  0x5a   : > { %p1795_p12 = pnand %p1794_p11, %p1788_p9 }
  0x5c   : > { %1798 = shalt.err (!%p1795_p12)
}
  0x5d   : > { %1601 = dma.hbm_to_vmem [thread:$0]  (!%p2156_p6), %s2578_s5, 256, %s2162_s21, [#allocation12], %s2056_s17, %s2056_s17, %s2057_s20  }
  0x5e   : > { %s2058_s22 = smov [#allocation14]   ;;  %s2059_s24 = smov [#allocation7]  }
  0x5f   : > { %s342_s23 = sshll.u32 %s2058_s22, 4  ;;  %s279_s25 = sshll.u32 %s2059_s24, 4  ;;  %s343_s23 = int_to_ptr.vmem [resolvable:$true] %s342_s23  ;;  %s280_s25 = int_to_ptr.vmem [resolvable:$true] %s279_s25 }
  0x60   : > { %s1799_s29 = scalar_lea.hbm %s2580_s7, 512 }
  0x61   : > { %p1800_p13 = scmp.ne.s32.totalorder %s2580_s7, %s1799_s29  ;;  %p1806_p5 = scmp.lt.u32.totalorder %s1799_s29, %s2580_s7 }
  0x63   : > { %p1802_p0 = pnand %p1800_p13, %p2172_p8 }
  0x65   : > { %p1803_p2 = pneg %p1802_p0 }
  0x67   : > { %p1808_p7 = pnand %p1806_p5, %p1803_p2 }
  0x69   : > { %1811 = shalt.err (!%p1808_p7)
}
  0x6a   : > { %s1812_s21 = scalar_lea.vmem %s343_s23, 512  ;;  %p1820_p11 = scmp.lt.s32.totalorder %s343_s23, %s343_s23 }
  0x6b   : > { %p1813_p9 = scmp.ne.s32.totalorder %s343_s23, %s1812_s21  ;;  %p1821_p12 = scmp.lt.s32.totalorder %s1812_s21, %s1812_s21 }
  0x6d   : > { %p1815_p4 = pnand %p1813_p9, %p2172_p8  ;;  %p1822_p1 = por %p1821_p12, %p1820_p11 }
  0x6f   : > { %p1816_p10 = pneg %p1815_p4 }
  0x71   : > { %p1823_p3 = pnand %p1822_p1, %p1816_p10 }
  0x73   : > { %1826 = shalt.err (!%p1823_p3)
}
  0x74   : > { %1607 = dma.hbm_to_vmem [thread:$0]  (!%p2156_p6), %s2580_s7, 512, %s343_s23, [#allocation15], %s2056_s17, %s2056_s17, %s2057_s20  }
  0x75   : > { %s1827_s26 = scalar_lea.hbm %s2575_s2, 64 }
  0x76   : > { %p1828_p1 = scmp.ne.s32.totalorder %s2575_s2, %s1827_s26  ;;  %p1834_p0 = scmp.lt.u32.totalorder %s1827_s26, %s2575_s2 }
  0x78   : > { %p1830_p3 = pnand %p1828_p1, %p2172_p8 }
  0x7a   : > { %p1831_p13 = pneg %p1830_p3 }
  0x7c   : > { %p1836_p2 = pnand %p1834_p0, %p1831_p13 }
  0x7e   : > { %1839 = shalt.err (!%p1836_p2)
}
  0x7f   : > { %s1840_s14 = scalar_lea.vmem %s280_s25, 64  ;;  %p1848_p4 = scmp.lt.s32.totalorder %s280_s25, %s280_s25 }
  0x80   : > { %p1841_p5 = scmp.ne.s32.totalorder %s280_s25, %s1840_s14  ;;  %p1849_p10 = scmp.lt.s32.totalorder %s1840_s14, %s1840_s14 }
  0x82   : > { %p1843_p7 = pnand %p1841_p5, %p2172_p8  ;;  %p1850_p11 = por %p1849_p10, %p1848_p4 }
  0x84   : > { %p1844_p9 = pneg %p1843_p7 }
  0x86   : > { %p1851_p12 = pnand %p1850_p11, %p1844_p9 }
  0x88   : > { %1854 = shalt.err (!%p1851_p12)
}
  0x89   : > { %s2060_s17 = smov 16   ;;  %s2061_s20 = smov 1  }
  0x8a   : > { %1592 = dma.hbm_to_vmem [thread:$0]  (!%p2156_p6), %s2575_s2, 64, %s280_s25, [#allocation6], %s2060_s17, %s2060_s17, %s2061_s20  }
  0x8b   : > { %s2062_s1 = smov [#allocation10]   ;;  %s2063_s22 = smov [#allocation13]  }
  0x8c   : > { %s305_s9 = sshll.u32 %s2062_s1, 4  ;;  %s332_s24 = sshll.u32 %s2063_s22, 4  ;;  %s306_s9 = int_to_ptr.vmem [resolvable:$true] %s305_s9  ;;  %s333_s24 = int_to_ptr.vmem [resolvable:$true] %s332_s24 }
  0x8d   : > { %s1855_s29 = scalar_lea.hbm %s2577_s4, 64 }
  0x8e   : > { %p1856_p1 = scmp.ne.s32.totalorder %s2577_s4, %s1855_s29  ;;  %p1862_p0 = scmp.lt.u32.totalorder %s1855_s29, %s2577_s4 }
  0x90   : > { %p1858_p3 = pnand %p1856_p1, %p2172_p8 }
  0x92   : > { %p1859_p13 = pneg %p1858_p3 }
  0x94   : > { %p1864_p2 = pnand %p1862_p0, %p1859_p13 }
  0x96   : > { %1867 = shalt.err (!%p1864_p2)
}
  0x97   : > { %s1868_s25 = scalar_lea.vmem %s306_s9, 64  ;;  %p1876_p4 = scmp.lt.s32.totalorder %s306_s9, %s306_s9 }
  0x98   : > { %p1869_p5 = scmp.ne.s32.totalorder %s306_s9, %s1868_s25  ;;  %p1877_p10 = scmp.lt.s32.totalorder %s1868_s25, %s1868_s25 }
  0x9a   : > { %p1871_p7 = pnand %p1869_p5, %p2172_p8  ;;  %p1878_p11 = por %p1877_p10, %p1876_p4 }
  0x9c   : > { %p1872_p9 = pneg %p1871_p7 }
  0x9e   : > { %p1879_p12 = pnand %p1878_p11, %p1872_p9 }
  0xa0   : > { %1882 = shalt.err (!%p1879_p12)
}
  0xa1   : > { %1598 = dma.hbm_to_vmem [thread:$0]  (!%p2156_p6), %s2577_s4, 64, %s306_s9, [#allocation9], %s2060_s17, %s2060_s17, %s2061_s20  }
  0xa2   : > { %s1883_s22 = scalar_lea.hbm %s2579_s6, 16 }
  0xa3   : > { %p1884_p1 = scmp.ne.s32.totalorder %s2579_s6, %s1883_s22  ;;  %p1890_p0 = scmp.lt.u32.totalorder %s1883_s22, %s2579_s6 }
  0xa5   : > { %p1886_p3 = pnand %p1884_p1, %p2172_p8 }
  0xa7   : > { %p1887_p13 = pneg %p1886_p3 }
  0xa9   : > { %p1892_p2 = pnand %p1890_p0, %p1887_p13 }
  0xab   : > { %1895 = shalt.err (!%p1892_p2)
}
  0xac   : > { %s1896_s18 = scalar_lea.vmem %s333_s24, 16  ;;  %s1903_s17 = scalar_lea.vmem %s333_s24, 32 }
  0xad   : > { %p1897_p5 = scmp.ne.s32.totalorder %s333_s24, %s1896_s18  ;;  %p1904_p4 = scmp.lt.s32.totalorder %s333_s24, %s333_s24 }
  0xae   : > { %p1905_p10 = scmp.lt.s32.totalorder %s1903_s17, %s1896_s18 }
  0xaf   : > { %p1899_p7 = pnand %p1897_p5, %p2172_p8 }
  0xb0   : > { %p1906_p11 = por %p1905_p10, %p1904_p4 }
  0xb1   : > { %p1900_p9 = pneg %p1899_p7 }
  0xb3   : > { %p1907_p12 = pnand %p1906_p11, %p1900_p9 }
  0xb5   : > { %1910 = shalt.err (!%p1907_p12)
}
  0xb6   : > { %1604 = dma.hbm_to_vmem [thread:$0]  (!%p2156_p6), %s2579_s6, 16, %s333_s24, [#allocation12]  }
  0xb7   : > { %s2064_s14 = smov [#allocation16]   ;;  %s1911_s3 = scalar_lea.hbm %s2581_s8, 16 }
  0xb8   : > { %s356_s25 = sshll.u32 %s2064_s14, 4  ;;  %p1912_p1 = scmp.ne.s32.totalorder %s2581_s8, %s1911_s3  ;;  %s357_s25 = int_to_ptr.vmem [resolvable:$true] %s356_s25 }
  0xb9   : > { %p1918_p0 = scmp.lt.u32.totalorder %s1911_s3, %s2581_s8 }
  0xba   : > { %p1914_p3 = pnand %p1912_p1, %p2172_p8 }
  0xbc   : > { %p1915_p13 = pneg %p1914_p3 }
  0xbe   : > { %p1920_p2 = pnand %p1918_p0, %p1915_p13 }
  0xc0   : > { %1923 = shalt.err (!%p1920_p2)
}
  0xc1   : > { %s1924_s24 = scalar_lea.vmem %s357_s25, 16  ;;  %s1931_s29 = scalar_lea.vmem %s357_s25, 32 }
  0xc2   : > { %p1925_p5 = scmp.ne.s32.totalorder %s357_s25, %s1924_s24  ;;  %p1932_p4 = scmp.lt.s32.totalorder %s357_s25, %s357_s25 }
  0xc3   : > { %p1933_p10 = scmp.lt.s32.totalorder %s1931_s29, %s1924_s24 }
  0xc4   : > { %p1927_p7 = pnand %p1925_p5, %p2172_p8 }
  0xc5   : > { %p1934_p11 = por %p1933_p10, %p1932_p4 }
  0xc6   : > { %p1928_p9 = pneg %p1927_p7 }
  0xc8   : > { %p1935_p12 = pnand %p1934_p11, %p1928_p9 }
  0xca   : > { %1938 = shalt.err (!%p1935_p12)
}
  0xcb   : > { %1610 = dma.hbm_to_vmem [thread:$0]  (!%p2156_p6), %s2581_s8, 16, %s357_s25, [#allocation15]  }
  0xcc   : > { %s1402_s27 = sadd.s32 4294967294, %s2051_s12   ;;  %s2343_s19 = sadd.s32 1, %s2051_s12  }
  0xcd   : > { %s33_s17 = ssub.s32 %s2051_s12, %s2343_s19  ;;  %s36_s20 = sadd.s32 1, %s2047_s11 }
  0xce   : > { %p34_p8 = scmp.eq.s32.totalorder %s33_s17, 0  ;;  %p43_p1 = scmp.ne.s32.totalorder %s2047_s11, %s2043_s10 }
  0xcf   : > { %p44_p3 = scmp.eq.s32.totalorder %s2051_s12, 0  ;;  %p49_p13 = scmp.ne.s32.totalorder %s2043_s10, %s2039_s30 }
  0xd0   : > { %s2354_s9 = scalar_select %p34_p8, %s2047_s11, %s36_s20  }
  0xd1   : > { %p2356_p0 = por %p44_p3, %p43_p1  ;;  %p2596_p2 = scmp.eq.s32.totalorder %s2140_s15, 0 }
  0xd2   : > { %p241_p5 = scmp.eq.s32.totalorder %s2140_s15, 1  ;;  %p247_p7 = scmp.eq.s32.totalorder %s1402_s27, 1 }
  0xd3   : > { %p2362_p6 = por %p2596_p2, %p49_p13  ;;  %p1627_p9 = scmp.lt.s32.totalorder %s2051_s12, 2 }
  0xd4   : > { %s367_s23 = sand.u32 1, %s2047_s11   ;;  %p2369_p4 = por %p241_p5, %p43_p1 }
  0xd5   : > { %p2373_p10 = por %p247_p7, %p49_p13  ;;  %s1413_s1 = sshll.u32 %s367_s23, 3 }
  0xd6   : > { %s2598_s21 = scalar_select %p2369_p4, 1, 0 }
  0xd7   : > { %s2599_s3 = scalar_select %p2373_p10, 1, 0 }
  0xd8   : > { %s1414_s22 = sshll.u32 %s2051_s12, 7  ;;  %s371_s29 = scalar_lea.vmem [#allocation2], %s1413_s1 }
  0xd9   : > { %s2381_s24 = scalar_lea.hbm %s2573_s0, %s1414_s22  ;;  %s378_s13 = sshll.u32 %s371_s29, 4  ;;  %s2383_s13 = int_to_ptr.vmem [resolvable:$true] %s378_s13 }
  0xda   : > { %p2387_p11 = pnand %p1627_p9, %p2356_p0  ;;  %s368_s27 = scalar_lea.sflag [#allocation3], %s367_s23 }
  0xdb   : > { %s1939_s17 = scalar_lea.hbm %s2381_s24, 128  ;;  %s1944_s22 = scalar_lea.hbm %s2573_s0, 256 }
  0xdc   : > { %p1940_p12 = scmp.ne.s32.totalorder %s2381_s24, %s1939_s17  ;;  %p1941_p8 = pneg %p2387_p11 }
  0xdd   : > { %p1945_p13 = scmp.lt.u32.totalorder %s2381_s24, %s2573_s0  ;;  %p1946_p0 = scmp.lt.u32.totalorder %s1944_s22, %s1939_s17 }
  0xde   : > { %p1942_p1 = pnand %p1941_p8, %p1940_p12  ;;  %p1948_p5 = scmp.lt.u32.totalorder %s1939_s17, %s2381_s24 }
  0xdf   : > { %p1947_p2 = por %p1946_p0, %p1945_p13 }
  0xe0   : > { %p1943_p3 = pneg %p1942_p1 }
  0xe1   : > { %p1949_p7 = por %p1948_p5, %p1947_p2 }
  0xe3   : > { %p1950_p9 = pnand %p1949_p7, %p1943_p3 }
  0xe5   : > { %1953 = shalt.err (!%p1950_p9)
}
  0xe6   : > { %s1954_s23 = scalar_lea.vmem %s2383_s13, 128  ;;  %s2065_s28 = smov [#allocation2]  }
  0xe7   : > { %p1955_p12 = scmp.ne.s32.totalorder %s2383_s13, %s1954_s23  ;;  %s1959_s29 = sshll.u32 %s2065_s28, 4  ;;  %s1960_s29 = int_to_ptr.vmem [resolvable:$false] %s1959_s29 }
  0xe8   : > { %s1961_s20 = scalar_lea.vmem %s1960_s29, 256  ;;  %p1962_p4 = scmp.lt.s32.totalorder %s2383_s13, %s1960_s29 }
  0xe9   : > { %p1957_p1 = pnand %p1955_p12, %p1941_p8  ;;  %p1963_p13 = scmp.lt.s32.totalorder %s1961_s20, %s1954_s23 }
  0xeb   : > { %p1958_p10 = pneg %p1957_p1  ;;  %p1964_p0 = por %p1963_p13, %p1962_p4 }
  0xed   : > { %p1965_p2 = pnand %p1964_p0, %p1958_p10 }
  0xef   : > { %1968 = shalt.err (!%p1965_p2)
}
  0xf0   : > { %1614 = dma.hbm_to_vmem [thread:$0]  (!%p2387_p11), %s2381_s24, 128, %s2383_s13, %s368_s27  }
  0xf1   : > { %p2601_p3 = scmp.ne.s32.totalorder %s2590_s16, 0 }
  0xf2   : > { %s2419_s17 = sand.u32 (!%p2601_p3), 1, %s2043_s10  }
  0xf3   : > { %387 = sbr.rel (%p2601_p3) target bundleno = 3230 (0xc9e), region = 56  ;;  %s1416_s1 = sshll.u32 (!%p2601_p3), %s2419_s17, 3 }
  0xf4   : > { %s390_s22 = scalar_lea.sflag (!%p2601_p3), [#allocation3], %s2419_s17  ;;  %s393_s14 = scalar_lea.vmem (!%p2601_p3), [#allocation2], %s1416_s1 }
  0xfa   : > { %2014 = dma.done.wait (%p2362_p6), %s390_s22, 128  }
  0xfb   : > { %2016 = vsyncadd (%p2362_p6), %s390_s22, 4294967168  ;;  %p2602_p4 = scmp.eq.s32.totalorder %s2140_s15, 0 }
  0xfd   : > { %2018 = dma.done.wait (%p2602_p4), [#allocation6], 320   ;;  %p2603_p10 = pmov %p2602_p4 }
  0xfe   : > { %p2604_p11 = pmov %p2602_p4 }
  0xff   : > { %2020 = vsyncadd (%p2603_p10), [#allocation6], 4294966976 }
 0x100   : > { %2022 = dma.done.wait (%p2604_p11), [#allocation9], 1088   ;;  %p2605_p8 = pmov %p2602_p4 }
 0x101   : > { %p2606_p5 = pmov %p2602_p4 }
 0x102   : > { %2024 = vsyncadd (%p2605_p8), [#allocation9], 4294966208 }
 0x103   : > { %2026 = dma.done.wait (%p2606_p5), [#allocation12], 272   ;;  %p2607_p7 = pmov %p2602_p4 }
 0x104   : > { %p2608_p6 = pmov %p2602_p4 }
 0x105   : > { %2028 = vsyncadd (%p2607_p7), [#allocation12], 4294967024 }
 0x106   : > { %2030 = dma.done.wait (%p2608_p6), [#allocation15], 528   ;;  %p2609_p9 = pmov %p2602_p4 }
 0x107   : > { %vm462_vm0 = vcmask 261120   ;;  %v461_v0 = vld [vmem:[%s393_s14] sm:$0xff]  ;;  %v2066_v5 = vmov 0.0   ;;  %vm2067_vm1 = vmmov 0   ;;  %v490_v15 = vlaneseq  ;;  %v489_v20 = vld [vmem:[#allocation5] sm:$0x7] }
 0x108   : > { %2032 = vsyncadd (%p2609_p9), [#allocation15], 4294966768  ;;  %v463_v1 = vsel %vm462_vm0, %v461_v0, 0.0  ;;  %v468_v2 = vmul.f32 %v461_v0, %v461_v0  ;;  %v1683_v4 = vld [vmem:[#allocation8] sm:$0xff]   ;;  %1486 = vmatprep.subr.bf16.mxu0 %v2066_v5  ;;  %1490 = vmatprep.mubr.msk.bf16.mxu0 %vm2067_vm1, %v2066_v5  ;;  %v1684_v6 = vld [vmem:[#allocation8 + $0x8] sm:$0xff]   ;;  %vm483_vm2 = vcmask 1040384  }
 0x109   : > { %464 = vadd.xlane.f32.xlu0 %v463_v1  ;;  %1487 = vmatpush3.bf16.msra.mxu0 %v1683_v4  ;;  %v491_v16 = vshrl.u32 %v490_v15, 7  ;;  %vm487_vm3 = vcmask 1046528   ;;  %v1426_v35 = vld [vmem:[#allocation7] ss:$0 sm:$0xff]  ;;  %v1427_v39 = vld [vmem:[#allocation10] ss:$0 sm:$0xff] }
 0x10a   : > { %v469_v3 = vsel %vm462_vm0, %v468_v2, 0.0  ;;  %1494 = vmatprep.subr.bf16.mxu1 %v2066_v5  ;;  %1488 = vmatprep.subr.bf16.mxu0 %v2066_v5  ;;  %v1685_v49 = vld [vmem:[#allocation8 + $0x10] sm:$0xff]   ;;  %v1686_v50 = vld [vmem:[#allocation8 + $0x18] sm:$0xff]   ;;  %v1432_v15 = vld [vmem:[#allocation10 + $0x1] ss:$0 sm:$0xff]  ;;  %vm1025_vm4 = vcmask 1043456  }
 0x10b   : > { %1498 = vmatprep.mubr.msk.bf16.mxu1 %vm2067_vm1, %v2066_v5  ;;  %v2455_v17 = vsub.s32 0, %v491_v16  ;;  %v2457_v18 = vsub.s32 1, %v491_v16  ;;  %v2459_v22 = vsub.s32 2, %v491_v16  ;;  %1495 = vmatpush3.bf16.msra.mxu1 %v1685_v49  ;;  %v607_v60 = vld [vmem:[#allocation5 + $0x4] sm:$0x7]  ;;  %vm1006_vm5 = vcmask 64512  }
 0x10c   : > { %1496 = vmatprep.subr.bf16.mxu1 %v2066_v5  ;;  %vm1196_vm6 = vcmask 523264   ;;  %s1459_s16 = sshll.u32 %s2140_s15, 7  ;;  %s459_s25 = scalar_lea.vmem [#allocation17], %s1416_s1 }
 0x10d   : > { %470 = vadd.xlane.f32.xlu0 %v469_v3  ;;  %1489 = vmatpush3.bf16.msra.mxu0 %v1684_v6  ;;  %v493_v24 = vrot.slane %v489_v20, %v2455_v17  ;;  %v498_v25 = vrot.slane %v489_v20, %v2457_v18  ;;  %v504_v28 = vrot.slane %v489_v20, %v2459_v22  ;;  %s1256_s24 = sshll.u32 %s459_s25, 4  ;;  %s2610_s27 = sld [smem:[#allocation26_spill]]  ;;  %s2530_s24 = int_to_ptr.vmem [resolvable:$true] %s1256_s24 }
 0x10e   : > { %1502 = vmatprep.subr.bf16.mxu0 %v2066_v5  ;;  %v611_v63 = vrot.slane %v607_v60, %v2455_v17  ;;  %v622_v3 = vrot.slane %v607_v60, %v2459_v22  ;;  %s1243_s15 = scalar_lea.sflag [#allocation4], %s2419_s17  ;;  %s1969_s23 = scalar_lea.vmem %s2530_s24, 128 }
 0x10f   : > { %1497 = vmatpush3.bf16.msra.mxu1 %v1686_v50  ;;  %p1970_p12 = scmp.ne.s32.totalorder %s2530_s24, %s1969_s23  ;;  %p2611_p1 = scmp.ne.s32.totalorder %s2598_s21, 0 }
 0x110   : > { %1510 = vmatprep.subr.bf16.mxu1 %v2066_v5  ;;  %s2068_s28 = smov [#allocation17]  }
 0x111   : > { %p1971_p13 = pnand %p1970_p12, %p2611_p1  ;;  %s1973_s29 = sshll.u32 %s2068_s28, 4  ;;  %s1974_s29 = int_to_ptr.vmem [resolvable:$false] %s1973_s29 }
 0x112   : > { %s1975_s20 = scalar_lea.vmem %s1974_s29, 256  ;;  %p1976_p2 = scmp.lt.s32.totalorder %s2530_s24, %s1974_s29 }
 0x113   : > { %s2528_s26 = scalar_lea.hbm %s2610_s27, %s1459_s16  ;;  %p1972_p0 = pneg %p1971_p13 }
 0x114   : > { %p1977_p3 = scmp.lt.s32.totalorder %s1975_s20, %s1969_s23 }
 0x116   : > { %p1978_p4 = por %p1977_p3, %p1976_p2 }
 0x118   : > { %p1979_p10 = pnand %p1978_p4, %p1972_p0 }
 0x196   : > { %v465_v7 = vpop.xlane.xlu0 %464 }
 0x197   : > { %v467_v8 = vmul.f32 0.03125, %v465_v7 }
 0x199   : > { %v473_v10 = vmul.f32 %v467_v8, %v467_v8  ;;  %v476_v19 = vsub.f32 %v461_v0, %v467_v8 }
 0x19a   : > { %v471_v9 = vpop.xlane.xlu0 %470 }
 0x19b   : > { %v472_v11 = vmul.f32 0.03125, %v471_v9 }
 0x19d   : > { %v474_v12 = vsub.f32 %v472_v11, %v473_v10  ;;  %v1431_v11 = vld [vmem:[#allocation7 + $0x1] ss:$0 sm:$0xff] }
 0x19f   : > { %v475_v13 = vmax.f32 %v474_v12, 0.0 }
 0x1a1   : > { %v477_v14 = vadd.f32 1e-06, %v475_v13 }
 0x1a3   : > { %1697 = vrsqrt.f32 %v477_v14 }
 0x1ad   : > { %v1698_v21 = vpop.eup %1697 }
 0x1ae   : > { %v479_v23 = vmul.f32 %v1698_v21, %v476_v19 }
 0x1b0   : > { %v481_v26 = vrot.slane %v479_v23, 7  ;;  %v485_v27 = vrot.slane %v479_v23, 1  ;;  %v499_v32 = vmul.f32 %v498_v25, %v479_v23 }
 0x1b2   : > { %v484_v29 = vsel %vm483_vm2, 0.0, %v481_v26  ;;  %v488_v30 = vsel %vm487_vm3, %v485_v27, 0.0 }
 0x1b3   : > { %v494_v31 = vmul.f32 %v493_v24, %v484_v29  ;;  %v505_v34 = vmul.f32 %v504_v28, %v488_v30  ;;  %v1687_v28 = vld [vmem:[#allocation8 + $0x20] sm:$0xff]   ;;  %v1688_v29 = vld [vmem:[#allocation8 + $0x28] sm:$0xff]  }
 0x1b5   : > { %v500_v33 = vadd.f32 %v499_v32, %v494_v31 }
 0x1b7   : > { %v506_v36 = vadd.f32 %v505_v34, %v500_v33 }
 0x1b9   : > { %v514_v37 = vadd.f32 %v1426_v35, %v506_v36 }
 0x1bb   : > { %v515_v38 = vpack.c.bf16 %v514_v37, %v514_v37 }
 0x1bd   : > { %1491 = vmatmul.mubr.msk.bf16.vlgmr.msra.gmra.mrb[0].mxu0 %vm462_vm0, %v515_v38 }
 0x1be   : > { %1506 = vmatprep.mubr.msk.bf16.mxu0 %vm2067_vm1, %v2066_v5  ;;  %1503 = vmatpush3.bf16.msra.mxu0 %v1687_v28 }
 0x1bf   : > { %1504 = vmatprep.subr.bf16.mxu0 %v2066_v5 }
 0x1c2   : > { %1505 = vmatpush3.bf16.msra.mxu0 %v1688_v29 }
 0x1c3   : > { %1518 = vmatprep.subr.bf16.mxu0 %v2066_v5 }
 0x290   : > { %v576_v40 = vpop.f32.mrb[0].mxu0 }
 0x291   : > { %v577_v41 = vadd.f32 %v1427_v39, %v576_v40  ;;  %v1492_v42 = vpop.f32.mrb[1].mxu0  ;;  %v728_v39 = vld [vmem:[#allocation5 + $0x8] sm:$0x7] }
 0x292   : > { %v579_v43 = vpop.f32.mrb[2].mxu0  ;;  %v732_v42 = vrot.slane %v728_v39, %v2455_v17 }
 0x293   : > { %v582_v44 = vadd.f32 %v577_v41, %v461_v0  ;;  %v1493_v45 = vpop.f32.mrb[3].mxu0  ;;  %v616_v0 = vrot.slane %v607_v60, %v2457_v18  ;;  %v737_v43 = vrot.slane %v728_v39, %v2457_v18 }
 0x295   : > { %v583_v46 = vsel %vm462_vm0, %v582_v44, 0.0  ;;  %v587_v47 = vmul.f32 %v582_v44, %v582_v44 }
 0x296   : > { %584 = vadd.xlane.f32.xlu1 %v583_v46  ;;  %v743_v46 = vrot.slane %v728_v39, %v2459_v22 }
 0x297   : > { %v588_v48 = vsel %vm462_vm0, %v587_v47, 0.0 }
 0x29a   : > { %589 = vadd.xlane.f32.xlu1 %v588_v48 }
 0x323   : > { %v585_v51 = vpop.xlane.xlu1 %584 }
 0x324   : > { %v586_v52 = vmul.f32 0.03125, %v585_v51 }
 0x326   : > { %v592_v54 = vmul.f32 %v586_v52, %v586_v52  ;;  %v595_v59 = vsub.f32 %v582_v44, %v586_v52 }
 0x327   : > { %v590_v53 = vpop.xlane.xlu1 %589 }
 0x328   : > { %v591_v55 = vmul.f32 0.03125, %v590_v53  ;;  %v1436_v53 = vld [vmem:[#allocation7 + $0x2] ss:$0 sm:$0xff] }
 0x32a   : > { %v593_v56 = vsub.f32 %v591_v55, %v592_v54 }
 0x32c   : > { %v594_v57 = vmax.f32 %v593_v56, 0.0 }
 0x32e   : > { %v596_v58 = vadd.f32 1e-06, %v594_v57  ;;  %v1437_v57 = vld [vmem:[#allocation10 + $0x2] ss:$0 sm:$0xff] }
 0x330   : > { %1699 = vrsqrt.f32 %v596_v58 }
 0x33a   : > { %v1700_v61 = vpop.eup %1699 }
 0x33b   : > { %v598_v62 = vmul.f32 %v1700_v61, %v595_v59 }
 0x33d   : > { %v600_v1 = vrot.slane %v598_v62, 7  ;;  %v603_v2 = vrot.slane %v598_v62, 1  ;;  %v617_v8 = vmul.f32 %v616_v0, %v598_v62 }
 0x33f   : > { %v602_v4 = vsel %vm483_vm2, 0.0, %v600_v1  ;;  %v605_v6 = vsel %vm487_vm3, %v603_v2, 0.0 }
 0x340   : > { %v612_v7 = vmul.f32 %v611_v63, %v602_v4  ;;  %v623_v10 = vmul.f32 %v622_v3, %v605_v6  ;;  %v1689_v3 = vld [vmem:[#allocation8 + $0x30] sm:$0xff]   ;;  %v1690_v4 = vld [vmem:[#allocation8 + $0x38] sm:$0xff]  }
 0x342   : > { %v618_v9 = vadd.f32 %v617_v8, %v612_v7 }
 0x344   : > { %v624_v12 = vadd.f32 %v623_v10, %v618_v9 }
 0x346   : > { %v633_v13 = vadd.f32 %v1431_v11, %v624_v12 }
 0x348   : > { %v634_v14 = vpack.c.bf16 %v633_v13, %v633_v13 }
 0x34a   : > { %1499 = vmatmul.mubr.msk.bf16.vlgmr.msra.gmra.mrb[0].mxu1 %vm462_vm0, %v634_v14 }
 0x34b   : > { %1514 = vmatprep.mubr.msk.bf16.mxu1 %vm2067_vm1, %v2066_v5  ;;  %1511 = vmatpush3.bf16.msra.mxu1 %v1689_v3 }
 0x34c   : > { %1512 = vmatprep.subr.bf16.mxu1 %v2066_v5 }
 0x34f   : > { %1513 = vmatpush3.bf16.msra.mxu1 %v1690_v4 }
 0x350   : > { %1524 = vmatprep.subr.bf16.mxu1 %v2066_v5 }
 0x41d   : > { %v697_v16 = vpop.f32.mrb[0].mxu1 }
 0x41e   : > { %v698_v19 = vadd.f32 %v1432_v15, %v697_v16  ;;  %v1500_v20 = vpop.f32.mrb[1].mxu1  ;;  %v849_v15 = vld [vmem:[#allocation5 + $0xc] sm:$0x7] }
 0x41f   : > { %v700_v21 = vpop.f32.mrb[2].mxu1  ;;  %v853_v20 = vrot.slane %v849_v15, %v2455_v17  ;;  %v1442_v17 = vld [vmem:[#allocation10 + $0x3] ss:$0 sm:$0xff] }
 0x420   : > { %v703_v23 = vadd.f32 %v698_v19, %v582_v44  ;;  %v1501_v24 = vpop.f32.mrb[3].mxu1  ;;  %v858_v21 = vrot.slane %v849_v15, %v2457_v18 }
 0x422   : > { %v704_v25 = vsel %vm462_vm0, %v703_v23, 0.0  ;;  %v708_v26 = vmul.f32 %v703_v23, %v703_v23 }
 0x423   : > { %705 = vadd.xlane.f32.xlu0 %v704_v25  ;;  %v864_v25 = vrot.slane %v849_v15, %v2459_v22 }
 0x424   : > { %v709_v27 = vsel %vm462_vm0, %v708_v26, 0.0 }
 0x425   : > { %710 = vadd.xlane.f32.xlu1 %v709_v27 }
 0x4b0   : > { %v706_v30 = vpop.xlane.xlu0 %705 }
 0x4b1   : > { %v707_v31 = vmul.f32 0.03125, %v706_v30 }
 0x4b2   : > { %v711_v32 = vpop.xlane.xlu1 %710 }
 0x4b3   : > { %v713_v33 = vmul.f32 %v707_v31, %v707_v31  ;;  %v712_v34 = vmul.f32 0.03125, %v711_v32  ;;  %v716_v38 = vsub.f32 %v703_v23, %v707_v31  ;;  %v1441_v32 = vld [vmem:[#allocation7 + $0x3] ss:$0 sm:$0xff] }
 0x4b5   : > { %v714_v35 = vsub.f32 %v712_v34, %v713_v33 }
 0x4b7   : > { %v715_v36 = vmax.f32 %v714_v35, 0.0 }
 0x4b9   : > { %v717_v37 = vadd.f32 1e-06, %v715_v36 }
 0x4bb   : > { %1701 = vrsqrt.f32 %v717_v37 }
 0x4c5   : > { %v1702_v40 = vpop.eup %1701 }
 0x4c6   : > { %v719_v41 = vmul.f32 %v1702_v40, %v716_v38 }
 0x4c8   : > { %v721_v44 = vrot.slane %v719_v41, 7  ;;  %v724_v45 = vrot.slane %v719_v41, 1  ;;  %v738_v50 = vmul.f32 %v737_v43, %v719_v41 }
 0x4ca   : > { %v723_v47 = vsel %vm483_vm2, 0.0, %v721_v44  ;;  %v726_v48 = vsel %vm487_vm3, %v724_v45, 0.0 }
 0x4cb   : > { %v733_v49 = vmul.f32 %v732_v42, %v723_v47  ;;  %v744_v52 = vmul.f32 %v743_v46, %v726_v48 }
 0x4cd   : > { %v739_v51 = vadd.f32 %v738_v50, %v733_v49 }
 0x4cf   : > { %v745_v54 = vadd.f32 %v744_v52, %v739_v51 }
 0x4d1   : > { %v754_v55 = vadd.f32 %v1436_v53, %v745_v54 }
 0x4d3   : > { %v755_v56 = vpack.c.bf16 %v754_v55, %v754_v55 }
 0x4d5   : > { %1507 = vmatmul.mubr.msk.bf16.vlgmr.msra.gmra.mrb[4].mxu0 %vm462_vm0, %v755_v56 }
 0x4d6   : > { %1520 = vmatprep.mubr.msk.bf16.mxu0 %vm2067_vm1, %v2066_v5 }
 0x5a8   : > { %v818_v58 = vpop.f32.mrb[4].mxu0 }
 0x5a9   : > { %v819_v59 = vadd.f32 %v1437_v57, %v818_v58  ;;  %v1508_v60 = vpop.f32.mrb[5].mxu0 }
 0x5aa   : > { %v821_v61 = vpop.f32.mrb[6].mxu0 }
 0x5ab   : > { %v824_v62 = vadd.f32 %v819_v59, %v703_v23  ;;  %v1509_v63 = vpop.f32.mrb[7].mxu0 }
 0x5ad   : > { %v825_v0 = vsel %vm462_vm0, %v824_v62, 0.0  ;;  %v829_v1 = vmul.f32 %v824_v62, %v824_v62 }
 0x5ae   : > { %826 = vadd.xlane.f32.xlu0 %v825_v0 }
 0x5af   : > { %v830_v2 = vsel %vm462_vm0, %v829_v1, 0.0 }
 0x5b0   : > { %831 = vadd.xlane.f32.xlu1 %v830_v2 }
 0x63b   : > { %v827_v6 = vpop.xlane.xlu0 %826 }
 0x63c   : > { %v828_v7 = vmul.f32 0.03125, %v827_v6 }
 0x63d   : > { %v832_v8 = vpop.xlane.xlu1 %831 }
 0x63e   : > { %v834_v9 = vmul.f32 %v828_v7, %v828_v7  ;;  %v833_v10 = vmul.f32 0.03125, %v832_v8  ;;  %v837_v14 = vsub.f32 %v824_v62, %v828_v7 }
 0x640   : > { %v835_v11 = vsub.f32 %v833_v10, %v834_v9 }
 0x642   : > { %v836_v12 = vmax.f32 %v835_v11, 0.0 }
 0x644   : > { %v838_v13 = vadd.f32 1e-06, %v836_v12 }
 0x646   : > { %1703 = vrsqrt.f32 %v838_v13 }
 0x650   : > { %v1704_v16 = vpop.eup %1703 }
 0x651   : > { %v840_v19 = vmul.f32 %v1704_v16, %v837_v14 }
 0x653   : > { %v842_v23 = vrot.slane %v840_v19, 7  ;;  %v845_v24 = vrot.slane %v840_v19, 1  ;;  %v859_v29 = vmul.f32 %v858_v21, %v840_v19 }
 0x655   : > { %v844_v26 = vsel %vm483_vm2, 0.0, %v842_v23  ;;  %v847_v27 = vsel %vm487_vm3, %v845_v24, 0.0 }
 0x656   : > { %v854_v28 = vmul.f32 %v853_v20, %v844_v26  ;;  %v865_v31 = vmul.f32 %v864_v25, %v847_v27  ;;  %v1691_v25 = vld [vmem:[#allocation11] sm:$0xff]   ;;  %v1692_v26 = vld [vmem:[#allocation11 + $0x8] sm:$0xff]   ;;  %v1693_v27 = vld [vmem:[#allocation14] sm:$0xff]  }
 0x658   : > { %v860_v30 = vadd.f32 %v859_v29, %v854_v28  ;;  %v1694_v28 = vld [vmem:[#allocation14 + $0x8] sm:$0xff]  }
 0x65a   : > { %v866_v33 = vadd.f32 %v865_v31, %v860_v30 }
 0x65c   : > { %v875_v34 = vadd.f32 %v1441_v32, %v866_v33 }
 0x65e   : > { %v876_v35 = vpack.c.bf16 %v875_v34, %v875_v34 }
 0x660   : > { %1515 = vmatmul.mubr.msk.bf16.vlgmr.msra.gmra.mrb[4].mxu1 %vm462_vm0, %v876_v35 }
 0x661   : > { %1526 = vmatprep.mubr.msk.bf16.mxu1 %vm2067_vm1, %v2066_v5 }
 0x733   : > { %v939_v18 = vpop.f32.mrb[4].mxu1 }
 0x734   : > { %v940_v22 = vadd.f32 %v1442_v17, %v939_v18  ;;  %v1516_v36 = vpop.f32.mrb[5].mxu1 }
 0x735   : > { %v942_v37 = vpop.f32.mrb[6].mxu1 }
 0x736   : > { %v945_v38 = vadd.f32 %v940_v22, %v824_v62  ;;  %v1517_v39 = vpop.f32.mrb[7].mxu1 }
 0x737   : > { %v1696_v39 = vld [vmem:[#allocation14 + $0x18] sm:$0xff]  }
 0x738   : > { %v946_v40 = vsel %vm462_vm0, %v945_v38, 0.0  ;;  %v950_v41 = vmul.f32 %v945_v38, %v945_v38 }
 0x739   : > { %947 = vadd.xlane.f32.xlu0 %v946_v40  ;;  %v1448_v40 = vld [vmem:[#allocation13] ss:$0 sm:$0xff] }
 0x73a   : > { %v951_v42 = vsel %vm462_vm0, %v950_v41, 0.0 }
 0x73b   : > { %952 = vadd.xlane.f32.xlu1 %v951_v42 }
 0x7c6   : > { %v948_v43 = vpop.xlane.xlu0 %947 }
 0x7c7   : > { %v949_v44 = vmul.f32 0.03125, %v948_v43 }
 0x7c8   : > { %v953_v45 = vpop.xlane.xlu1 %952 }
 0x7c9   : > { %v955_v46 = vmul.f32 %v949_v44, %v949_v44  ;;  %v954_v47 = vmul.f32 0.03125, %v953_v45  ;;  %v958_v51 = vsub.f32 %v945_v38, %v949_v44 }
 0x7cb   : > { %v956_v48 = vsub.f32 %v954_v47, %v955_v46 }
 0x7cd   : > { %v957_v49 = vmax.f32 %v956_v48, 0.0  ;;  %v1452_v48 = vld [vmem:[#allocation16] ss:$0 sm:$0xff] }
 0x7cf   : > { %v959_v50 = vadd.f32 1e-06, %v957_v49 }
 0x7d1   : > { %1705 = vrsqrt.f32 %v959_v50 }
 0x7db   : > { %v1706_v52 = vpop.eup %1705 }
 0x7dc   : > { %v961_v53 = vmul.f32 %v1706_v52, %v958_v51 }
 0x7de   : > { %v962_v54 = vpack.c.bf16 %v961_v53, %v961_v53 }
 0x7e0   : > { %v964_v55 = vsel %vm462_vm0, %v962_v54, 0  ;;  %v1026_v56 = vsel %vm1025_vm4, %v962_v54, 0 }
 0x7e1   : > { %1519 = vmatpush3.bf16.xpose.msra.mxu0 %v964_v55  ;;  %1525 = vmatpush3.bf16.msra.mxu1 %v1026_v56 }
 0x7e2   : > { %1530 = vmatprep.subr.bf16.mxu0 %v2066_v5  ;;  %1538 = vmatprep.subr.bf16.mxu1 %v2066_v5 }
 0x7e8   : > { %1521 = vmatmul.mubr.msk.bf16.vlgmr.msra.gmra.mrb[8].mxu0 %vm462_vm0, %v962_v54 }
 0x7e9   : > { %1534 = vmatprep.mubr.msk.bf16.mxu0 %vm2067_vm1, %v2066_v5  ;;  %1531 = vmatpush3.bf16.msra.mxu0 %v1691_v25 }
 0x7ea   : > { %1532 = vmatprep.subr.bf16.mxu0 %v2066_v5 }
 0x7ed   : > { %1533 = vmatpush3.bf16.msra.mxu0 %v1692_v26 }
 0x8bb   : > { %v1000_v57 = vpop.f32.mrb[8].mxu0 }
 0x8bc   : > { %v1522_v58 = vpop.f32.mrb[9].mxu0  ;;  %v1007_v59 = vsel %vm1006_vm5, %v1000_v57, -inf }
 0x8bd   : > { %1008 = vmax.xlane.f32.xlu0 %v1007_v59  ;;  %v1003_v60 = vpop.f32.mrb[10].mxu0 }
 0x8be   : > { %v1523_v61 = vpop.f32.mrb[11].mxu0 }
 0x94a   : > { %v1009_v62 = vpop.xlane.xlu0 %1008 }
 0x94b   : > { %v1013_v63 = vsub.f32 %v1000_v57, %v1009_v62  ;;  %v1010_v4 = vsub.f32 -inf, %v1009_v62 }
 0x94d   : > { %v1014_v0 = vmul.f32 1.442695, %v1013_v63  ;;  %v1011_v6 = vmul.f32 1.442695, %v1010_v4 }
 0x94f   : > { %1707 = vpow2.f32 %v1014_v0 }
 0x950   : > { %1709 = vpow2.f32 %v1011_v6 }
 0x959   : > { %v1708_v1 = vpop.eup %1707 }
 0x95a   : > { %v1017_v2 = vsel %vm1006_vm5, %v1708_v1, 0.0  ;;  %v1021_v3 = vpack.c.bf16 %v1708_v1, %v1708_v1  ;;  %v1710_v7 = vpop.eup %1709 }
 0x95b   : > { %1018 = vadd.xlane.f32.xlu1 %v1017_v2  ;;  %v1016_v9 = vmul.f32 0.0, %v1710_v7 }
 0x95c   : > { %1527 = vmatmul.mubr.msk.bf16.vlgmr.msra.gmra.mrb[8].mxu1 %vm1006_vm5, %v1021_v3 }
 0x95d   : > { %1546 = vmatprep.mubr.msk.bf16.mxu1 %vm2067_vm1, %v2066_v5  ;;  %1539 = vmatpush3.bf16.msra.mxu1 %v1693_v27 }
 0x95e   : > { %1540 = vmatprep.subr.bf16.mxu1 %v2066_v5 }
 0x961   : > { %1541 = vmatpush3.bf16.msra.mxu1 %v1694_v28 }
 0x962   : > { %1542 = vmatprep.subr.bf16.mxu1 %v2066_v5 }
 0x9e8   : > { %v1019_v8 = vpop.xlane.xlu1 %1018 }
 0x9e9   : > { %v1020_v10 = vadd.f32 %v1019_v8, %v1016_v9 }
 0x9eb   : > { %1711 = vrcp.f32 %v1020_v10 }
 0x9f5   : > { %v1712_v14 = vpop.eup %1711 }
 0xa2f   : > { %v1062_v11 = vpop.f32.mrb[8].mxu1 }
 0xa30   : > { %v1068_v12 = vadd.f32 %v1062_v11, %v1016_v9  ;;  %v1528_v13 = vpop.f32.mrb[9].mxu1 }
 0xa31   : > { %v1065_v15 = vpop.f32.mrb[10].mxu1 }
 0xa32   : > { %v1070_v16 = vmul.f32 %v1712_v14, %v1068_v12  ;;  %v1529_v19 = vpop.f32.mrb[11].mxu1 }
 0xa34   : > { %v1071_v20 = vadd.f32 %v1070_v16, %v945_v38  ;;  %v1695_v38 = vld [vmem:[#allocation14 + $0x10] sm:$0xff]  }
 0xa35   : > { %1543 = vmatpush3.bf16.msra.mxu1 %v1695_v38 }
 0xa36   : > { %v1072_v21 = vsel %vm462_vm0, %v1071_v20, 0.0  ;;  %v1076_v23 = vmul.f32 %v1071_v20, %v1071_v20  ;;  %1544 = vmatprep.subr.bf16.mxu1 %v2066_v5 }
 0xa37   : > { %1073 = vadd.xlane.f32.xlu0 %v1072_v21 }
 0xa38   : > { %v1077_v24 = vsel %vm462_vm0, %v1076_v23, 0.0 }
 0xa39   : > { %1078 = vadd.xlane.f32.xlu1 %v1077_v24  ;;  %1545 = vmatpush3.bf16.msra.mxu1 %v1696_v39 }
 0xac4   : > { %v1074_v29 = vpop.xlane.xlu0 %1073 }
 0xac5   : > { %v1075_v30 = vmul.f32 0.03125, %v1074_v29 }
 0xac6   : > { %v1079_v31 = vpop.xlane.xlu1 %1078 }
 0xac7   : > { %v1081_v32 = vmul.f32 %v1075_v30, %v1075_v30  ;;  %v1080_v33 = vmul.f32 0.03125, %v1079_v31  ;;  %v1084_v18 = vsub.f32 %v1071_v20, %v1075_v30 }
 0xac9   : > { %v1082_v34 = vsub.f32 %v1080_v33, %v1081_v32 }
 0xacb   : > { %v1083_v35 = vmax.f32 %v1082_v34, 0.0 }
 0xacd   : > { %v1085_v17 = vadd.f32 1e-06, %v1083_v35 }
 0xacf   : > { %1713 = vrsqrt.f32 %v1085_v17 }
 0xad9   : > { %v1714_v22 = vpop.eup %1713 }
 0xada   : > { %v1087_v36 = vmul.f32 %v1714_v22, %v1084_v18 }
 0xadc   : > { %v1088_v37 = vpack.c.bf16 %v1087_v36, %v1087_v36 }
 0xade   : > { %1535 = vmatmul.mubr.msk.bf16.vlgmr.msra.gmra.mrb[12].mxu0 %vm462_vm0, %v1088_v37 }
 0xbb1   : > { %v1149_v41 = vpop.f32.mrb[12].mxu0 }
 0xbb2   : > { %v1150_v42 = vadd.f32 %v1448_v40, %v1149_v41  ;;  %v1536_v43 = vpop.f32.mrb[13].mxu0 }
 0xbb3   : > { %v1152_v44 = vpop.f32.mrb[14].mxu0 }
 0xbb4   : > { %v1155_v45 = vmax.f32 %v1150_v42, 0.0  ;;  %v1537_v46 = vpop.f32.mrb[15].mxu0 }
 0xbb6   : > { %v1156_v47 = vpack.c.bf16 %v1155_v45, %v1155_v45 }
 0xbb8   : > { %1547 = vmatmul.mubr.msk.bf16.vlgmr.msra.gmra.mrb[12].mxu1 %vm1196_vm6, %v1156_v47 }
 0xc8b   : > { %v1234_v49 = vpop.f32.mrb[12].mxu1 }
 0xc8c   : > { %v1235_v5 = vadd.f32 %v1452_v48, %v1234_v49  ;;  %v1548_v50 = vpop.f32.mrb[13].mxu1 }
 0xc8d   : > { %v1237_v51 = vpop.f32.mrb[14].mxu1 }
 0xc8e   : > { %v1240_v52 = vadd.f32 %v1235_v5, %v1071_v20  ;;  %v1549_v53 = vpop.f32.mrb[15].mxu1 }
 0xc90   : > { %1241 = vst.msk [vmem:[%s459_s25] sm:$0xff] %vm462_vm0, %v1240_v52 }
 0xc91   : > { %1982 = shalt.err (!%p1979_p10)
}
 0xc92   : > { %s1983_s17 = scalar_lea.hbm %s2528_s26, 128  ;;  %s1987_s14 = scalar_lea.hbm %s2610_s27, 256 }
 0xc93   : > { %p1984_p11 = scmp.ne.s32.totalorder %s2528_s26, %s1983_s17  ;;  %p1988_p7 = scmp.lt.u32.totalorder %s2528_s26, %s2610_s27 }
 0xc94   : > { %p1989_p6 = scmp.lt.u32.totalorder %s1987_s14, %s1983_s17  ;;  %p1991_p12 = scmp.lt.u32.totalorder %s1983_s17, %s2528_s26 }
 0xc95   : > { %p1985_p8 = pnand %p1984_p11, %p2611_p1 }
 0xc96   : > { %p1990_p9 = por %p1989_p6, %p1988_p7 }
 0xc97   : > { %p1986_p5 = pneg %p1985_p8 }
 0xc98   : > { %p1992_p13 = por %p1991_p12, %p1990_p9 }
 0xc9a   : > { %p1993_p0 = pnand %p1992_p13, %p1986_p5 }
 0xc9c   : > { %1996 = shalt.err (!%p1993_p0)
}
 0xc9d   : > { %1584 = dma.vmem_to_hbm [thread:$0]  (%p2611_p1), %s2530_s24, 128, %s2528_s26, %s1243_s15  }
 0xc9e PF: > { %s1268_s13 = sand.u32 1, %s2039_s30   ;;  %p2612_p2 = scmp.ne.s32.totalorder %s2599_s3, 0 }
 0xc9f   : > { %p2613_p3 = scmp.ge.s32.totalorder %s2051_s12, 2  ;;  %s1269_s18 = scalar_lea.sflag [#allocation4], %s1268_s13 }
 0xca1   : > { %p1616_p4 = pnand %p2613_p3, %p2612_p2 }
 0xca3   : > { %2034 = dma.done.wait (!%p1616_p4), %s1269_s18, 128  }
 0xca4   : > { %2036 = vsyncadd (!%p1616_p4), %s1269_s18, 4294967168  ;;  %p26_p10 = scmp.ge.s32.totalorder %s2343_s19, 4   ;;  %s2614_s30 = smov %s2043_s10 }
 0xca5   : > { %s2615_s10 = smov %s2047_s11  ;;  %s2616_s11 = smov %s2354_s9 }
 0xca6   : > { %s2617_s12 = smov %s2343_s19  ;;  %28 = sbr.rel (!%p26_p10) target bundleno = 13 (0xd), region = 145 }
 0xcad   :  { %1274 = vsyncpa [#allocation3], 1 }
 0xcae   :  { %1276 = vsyncpa [#allocation3 + $0x1], 1 }
 0xcaf   :  { %1277 = vsyncpa [#allocation6], 1 }
 0xcb0   :  { %1278 = vsyncpa [#allocation9], 1 }
 0xcb1   :  { %1279 = vsyncpa [#allocation12], 1 }
 0xcb2   :  { %1280 = vsyncpa [#allocation15], 1 }
 0xcb3   :  { %1281 = vsyncpa [#allocation4], 1 }
 0xcb4   :  { %1283 = vsyncpa [#allocation4 + $0x1], 1 }

</bundles_post_ra>
